<compile_context>
chip_gen: v5e
topology: v5e:2x2
jax: 0.10.0
libtpu: 0.0.40
codegen_flags: <defaults>
</compile_context>

<pallas_src>
import functools

import jax
import jax.numpy as jnp
from jax.experimental import pallas as pl
from jax.experimental.pallas import tpu as pltpu


# ----------------- Kernel A: hoisted input projection (x @ W_ih + b) ----------

def in_proj_kernel(x_ref, w_ref, b_ref, o_ref):
    o_ref[...] = (jnp.dot(x_ref[...], w_ref[...],
                          preferred_element_type=jnp.float32)
                  + b_ref[...]).astype(o_ref.dtype)


def run_input_projection(x2d, w_ih_t, bias, tile_m=512):
    """x2d: [T*B, E]; w_ih_t: [E, 4H]; bias: [1, 4H] -> [T*B, 4H]."""
    M, E = x2d.shape
    G4 = w_ih_t.shape[1]
    tile_m = min(tile_m, M)
    grid = (pl.cdiv(M, tile_m),)
    return pl.pallas_call(
        in_proj_kernel,
        out_shape=jax.ShapeDtypeStruct((M, G4), jnp.float32),
        grid_spec=pltpu.PrefetchScalarGridSpec(
            num_scalar_prefetch=0,
            grid=grid,
            in_specs=[
                pl.BlockSpec((tile_m, E), lambda m: (m, 0)),
                pl.BlockSpec((E, G4), lambda m: (0, 0)),
                pl.BlockSpec((1, G4), lambda m: (0, 0)),
            ],
            out_specs=pl.BlockSpec((tile_m, G4), lambda m: (m, 0)),
        ),
        compiler_params=pltpu.CompilerParams(
            dimension_semantics=("parallel",)),
    )(x2d, w_ih_t, bias)


# --------- Kernel B: LSTM recurrence (chunked time loop) + fused o2p ----------

def lstm_o2p_kernel(xw_ref, whh_ref, wo2p_ref, bo2p_ref, eps_ref,
                    out_ref, hT_ref, cT_ref, mu_ref, logvar_ref, z_ref,
                    h_sc, c_sc, *, T, t_chunk, H, L):
    c_idx = pl.program_id(0)
    last = pl.num_programs(0) - 1

    @pl.when(c_idx == 0)
    def _():
        h_sc[...] = jnp.zeros_like(h_sc)
        c_sc[...] = jnp.zeros_like(c_sc)

    whh = whh_ref[...]  # (H, 4H) resident in VMEM, hoisted out of the loop

    # Number of valid steps in this chunk (static if T divides evenly).
    if T % t_chunk == 0:
        steps = t_chunk
    else:
        steps = jnp.minimum(t_chunk, T - c_idx * t_chunk)

    def step(s, carry):
        h, c = carry
        # Input projection was precomputed; per-step MXU work is h @ W_hh only.
        gates = xw_ref[s] + jnp.dot(h, whh, preferred_element_type=jnp.float32)
        # Gate columns pre-permuted to [i, f, o, g]: sigmoid over one
        # contiguous 3H slice, tanh over the trailing H slice.
        sig = jax.nn.sigmoid(gates[:, :3 * H])
        g = jnp.tanh(gates[:, 3 * H:])
        i = sig[:, 0 * H:1 * H]
        f = sig[:, 1 * H:2 * H]
        o = sig[:, 2 * H:3 * H]
        c_new = f * c + i * g
        h_new = o * jnp.tanh(c_new)
        out_ref[s] = h_new.astype(out_ref.dtype)  # VMEM write; one HBM DMA/chunk
        return h_new, c_new

    h0 = h_sc[...]
    c0 = c_sc[...]
    if isinstance(steps, int):
        hN, cN = jax.lax.fori_loop(0, steps, step, (h0, c0),
                                   unroll=steps <= 16)
    else:
        hN, cN = jax.lax.fori_loop(0, steps, step, (h0, c0))
    h_sc[...] = hN
    c_sc[...] = cN

    # Fused epilogue: final states + o2p linear + reparameterized sample.
    @pl.when(c_idx == last)
    def _():
        hT_ref[...] = hN.astype(hT_ref.dtype)
        cT_ref[...] = cN.astype(cT_ref.dtype)
        ps = (jnp.dot(hN, wo2p_ref[...], preferred_element_type=jnp.float32)
              + bo2p_ref[...])                    # (B, 2L)
        mu = ps[:, :L]
        logvar = ps[:, L:]
        mu_ref[...] = mu
        logvar_ref[...] = logvar
        z_ref[...] = mu + eps_ref[...] * jnp.exp(logvar * 0.5)


def _pick_t_chunk(T, B, G4, H, requested, vmem_budget_bytes=8 << 20):
    """Cap chunk length so double-buffered xw/out chunks stay well under the
    scoped-VMEM limit on all generations (incl. v7x's 64 MiB)."""
    per_step_bytes = (B * G4 + B * H) * 4          # f32 xw slice + out slice
    cap = max(8, vmem_budget_bytes // (2 * per_step_bytes))
    return max(1, min(int(requested), int(cap), int(T)))


def run_lstm_o2p(xw, w_hh_t, w_o2p_t, b_o2p, eps, t_chunk=128):
    """xw: [T, B, 4H] precomputed x@W_ih+b (gate cols already [i,f,o,g]);
    returns (outputs [T,B,H], hT [B,H], cT [B,H], mu [B,L], logvar [B,L],
    z [B,L])."""
    T, B, G4 = xw.shape
    H = w_hh_t.shape[0]
    L = w_o2p_t.shape[1] // 2
    t_chunk = _pick_t_chunk(T, B, G4, H, t_chunk)
    num_chunks = pl.cdiv(T, t_chunk)

    kernel = functools.partial(lstm_o2p_kernel, T=T, t_chunk=t_chunk, H=H, L=L)

    out_shapes = (
        jax.ShapeDtypeStruct((T, B, H), jnp.float32),   # memory bank
        jax.ShapeDtypeStruct((B, H), jnp.float32),      # h_T
        jax.ShapeDtypeStruct((B, H), jnp.float32),      # c_T
        jax.ShapeDtypeStruct((B, L), jnp.float32),      # mu
        jax.ShapeDtypeStruct((B, L), jnp.float32),      # logvar
        jax.ShapeDtypeStruct((B, L), jnp.float32),      # z
    )
    grid_spec = pltpu.PrefetchScalarGridSpec(
        num_scalar_prefetch=0,
        grid=(num_chunks,),
        in_specs=[
            pl.BlockSpec((t_chunk, B, G4), lambda c: (c, 0, 0)),
            pl.BlockSpec((H, G4), lambda c: (0, 0)),
            pl.BlockSpec((H, 2 * L), lambda c: (0, 0)),
            pl.BlockSpec((1, 2 * L), lambda c: (0, 0)),
            pl.BlockSpec((B, L), lambda c: (0, 0)),
        ],
        out_specs=[
            pl.BlockSpec((t_chunk, B, H), lambda c: (c, 0, 0)),
            pl.BlockSpec((B, H), lambda c: (0, 0)),
            pl.BlockSpec((B, H), lambda c: (0, 0)),
            pl.BlockSpec((B, L), lambda c: (0, 0)),
            pl.BlockSpec((B, L), lambda c: (0, 0)),
            pl.BlockSpec((B, L), lambda c: (0, 0)),
        ],
        scratch_shapes=[
            pltpu.VMEM((B, H), jnp.float32),   # h carried across chunks
            pltpu.VMEM((B, H), jnp.float32),   # c carried across chunks
        ],
    )
    return pl.pallas_call(
        kernel,
        out_shape=out_shapes,
        grid_spec=grid_spec,
        compiler_params=pltpu.CompilerParams(
            dimension_semantics=("arbitrary",)),  # sequential recurrence
    )(xw, w_hh_t, w_o2p_t, b_o2p, eps)


# ------------------------------ Full forward ----------------------------------

def _reorder_gate_cols(w):
    """PyTorch LSTM gate order along the 4H axis is [i, f, g, o]; the kernel
    wants [i, f, o, g] so sigmoid/tanh each act on one contiguous slice."""
    i, f, g, o = jnp.split(w, 4, axis=-1)
    return jnp.concatenate([i, f, o, g], axis=-1)


def vae_rnn_encoder_forward(params, input_ids, eps, t_chunk=128):
    """input_ids: [T, B, 1] int32 (LongTensor len x batch x nfeat)."""
    ids = input_ids[..., 0]                                   # [T, B]
    emb = jnp.take(params["emb_table"], ids, axis=0)          # [T, B, E] (glue)
    T, B, E = emb.shape
    H = params["w_hh_t"].shape[0]

    # One-time glue: fold gate reordering into the weights / bias.
    w_ih_t = _reorder_gate_cols(params["w_ih_t"])
    w_hh_t = _reorder_gate_cols(params["w_hh_t"])
    bias = _reorder_gate_cols(params["bias_rnn"])

    # Hoisted input projection: one batched matmul for the whole sequence.
    xw2d = run_input_projection(emb.reshape(T * B, E), w_ih_t, bias)
    xw = xw2d.reshape(T, B, 4 * H)

    outputs, hT, cT, mu, logvar, z = run_lstm_o2p(
        xw, w_hh_t, params["w_o2p_t"], params["b_o2p"], eps, t_chunk=t_chunk)

    hidden_t = (hT[None], cT[None])                           # (1,B,H) each
    # TODO(synk): pack_padded_sequence / lengths-based masking not implemented
    # (lengths=None path only).
    return mu, logvar, z, hidden_t, outputs


# --------------------------- pure-JAX reference --------------------------------

def lstm_ref(emb, w_ih_t, w_hh_t, bias):
    T, B, E = emb.shape
    H = w_hh_t.shape[0]

    def step(carry, x):
        h, c = carry
        gates = x @ w_ih_t + h @ w_hh_t + bias[0]
        i = jax.nn.sigmoid(gates[:, 0 * H:1 * H])
        f = jax.nn.sigmoid(gates[:, 1 * H:2 * H])
        g = jnp.tanh(gates[:, 2 * H:3 * H])
        o = jax.nn.sigmoid(gates[:, 3 * H:4 * H])
        c = f * c + i * g
        h = o * jnp.tanh(c)
        return (h, c), h

    init = (jnp.zeros((B, H), jnp.float32), jnp.zeros((B, H), jnp.float32))
    (hT, cT), outs = jax.lax.scan(step, init, emb)
    return outs, hT, cT


# ----------------------------------- main --------------------------------------

if __name__ == "__main__":
    # Small shapes consistent with the module.
    T, B, VOCAB, E, H, L = 8, 8, 50, 16, 32, 16   # L = hidden_code_len

    key = jax.random.PRNGKey(0)
    ks = jax.random.split(key, 8)

    params = {
        "emb_table": jax.random.normal(ks[0], (VOCAB, E), jnp.float32) * 0.1,
        # PyTorch stores weight_ih_l0 (4H,E); we pass its transpose (E,4H).
        "w_ih_t":    jax.random.normal(ks[1], (E, 4 * H), jnp.float32) * 0.1,
        "w_hh_t":    jax.random.normal(ks[2], (H, 4 * H), jnp.float32) * 0.1,
        # b_ih + b_hh folded into one bias, kept 2-D for broadcasting.
        "bias_rnn":  jax.random.normal(ks[3], (1, 4 * H), jnp.float32) * 0.1,
        # o2p: Linear(H * num_layers, 2L); pass weight transposed (H, 2L).
        "w_o2p_t":   jax.random.normal(ks[4], (H, 2 * L), jnp.float32) * 0.1,
        "b_o2p":     jax.random.normal(ks[5], (1, 2 * L), jnp.float32) * 0.1,
    }

    input_ids = jax.random.randint(ks[6], (T, B, 1), 0, VOCAB, jnp.int32)
    eps = jax.random.normal(ks[7], (B, L), jnp.float32)  # torch.randn equivalent

    fwd = jax.jit(functools.partial(vae_rnn_encoder_forward, t_chunk=128))
    mu, logvar, z, hidden_t, outputs = jax.block_until_ready(
        fwd(params, input_ids, eps))

    # Verify against a pure-JAX reference of the same math (original weights).
    emb_ref = jnp.take(params["emb_table"], input_ids[..., 0], axis=0)
    outs_r, hT_r, cT_r = lstm_ref(
        emb_ref, params["w_ih_t"], params["w_hh_t"], params["bias_rnn"])
    ps_r = outs_r[-1] @ params["w_o2p_t"] + params["b_o2p"][0]
    mu_r, logvar_r = ps_r[:, :L], ps_r[:, L:]
    z_r = mu_r + eps * jnp.exp(logvar_r * 0.5)

    assert jnp.allclose(outputs, outs_r, atol=1e-5), "LSTM outputs mismatch"
    assert jnp.allclose(hidden_t[0][0], hT_r, atol=1e-5), "h_T mismatch"
    assert jnp.allclose(hidden_t[1][0], cT_r, atol=1e-5), "c_T mismatch"
    assert jnp.allclose(mu, mu_r, atol=1e-5), "mu mismatch"
    assert jnp.allclose(logvar, logvar_r, atol=1e-5), "logvar mismatch"
    assert jnp.allclose(z, z_r, atol=1e-5), "z mismatch"

    print("KERNEL_OK")
</pallas_src>

<mosaic_0001>
module attributes {stable_mosaic.version = 11 : i64} {
  func.func @in_proj_kernel(%arg0: i32, %arg1: memref<64x16xf32, #tpu.memory_space<vmem>>, %arg2: memref<16x128xf32, #tpu.memory_space<vmem>>, %arg3: memref<1x128xf32, #tpu.memory_space<vmem>>, %arg4: memref<64x128xf32, #tpu.memory_space<vmem>>) attributes {dimension_semantics = [#tpu.dimension_semantics<parallel>], iteration_bounds = array<i64: 1>, scalar_prefetch = 0 : i64, scratch_operands = 0 : i64, tpu.core_type = #tpu.core_type<tc>, window_params = [{transform_indices = @transform_0, window_bounds = array<i64: 64, 16>}, {pipeline_mode = #tpu.pipeline_mode<synchronous>, transform_indices = @transform_1, window_bounds = array<i64: 16, 128>}, {pipeline_mode = #tpu.pipeline_mode<synchronous>, transform_indices = @transform_2, window_bounds = array<i64: 1, 128>}, {transform_indices = @transform_3, window_bounds = array<i64: 64, 128>}]} {
    %c0 = arith.constant 0 : index
    %c0_0 = arith.constant 0 : index
    %0 = vector.load %arg1[%c0, %c0_0] : memref<64x16xf32, #tpu.memory_space<vmem>>, vector<64x16xf32>
    %c0_1 = arith.constant 0 : index
    %c0_2 = arith.constant 0 : index
    %1 = vector.load %arg2[%c0_1, %c0_2] : memref<16x128xf32, #tpu.memory_space<vmem>>, vector<16x128xf32>
    %cst = arith.constant dense<0.000000e+00> : vector<64x128xf32>
    %2 = tpu.matmul %0, %1, %cst {dimension_numbers = #tpu.dot_dimension_numbers<[1], [0], [0], [1], [0, 0, 1, 1], [], []>} : vector<64x16xf32>, vector<16x128xf32>, vector<64x128xf32> -> vector<64x128xf32>
    %c0_3 = arith.constant 0 : index
    %c0_4 = arith.constant 0 : index
    %3 = vector.load %arg3[%c0_3, %c0_4] : memref<1x128xf32, #tpu.memory_space<vmem>>, vector<1x128xf32>
    %4 = vector.broadcast %3 : vector<1x128xf32> to vector<64x128xf32>
    %5 = arith.addf %2, %4 : vector<64x128xf32>
    %c0_5 = arith.constant 0 : index
    %c0_6 = arith.constant 0 : index
    %6 = vector.load %arg4[%c0_5, %c0_6] : memref<64x128xf32, #tpu.memory_space<vmem>>, vector<64x128xf32>
    tpu.vector_store %arg4[%c0_5, %c0_6], %5 {strides = array<i32>} : memref<64x128xf32, #tpu.memory_space<vmem>>, vector<64x128xf32>,
    return
  }
  func.func @transform_0(%arg0: i32) -> (i32, i32) {
    %c0_i32 = arith.constant 0 : i32
    %c0_i32_0 = arith.constant 0 : i32
    return %arg0, %c0_i32 : i32, i32
  }
  func.func @transform_1(%arg0: i32) -> (i32, i32) {
    %c0_i32 = arith.constant 0 : i32
    %c0_i32_0 = arith.constant 0 : i32
    %c0_i32_1 = arith.constant 0 : i32
    return %c0_i32, %c0_i32_0 : i32, i32
  }
  func.func @transform_2(%arg0: i32) -> (i32, i32) {
    %c0_i32 = arith.constant 0 : i32
    %c0_i32_0 = arith.constant 0 : i32
    %c0_i32_1 = arith.constant 0 : i32
    return %c0_i32, %c0_i32_0 : i32, i32
  }
  func.func @transform_3(%arg0: i32) -> (i32, i32) {
    %c0_i32 = arith.constant 0 : i32
    %c0_i32_0 = arith.constant 0 : i32
    return %arg0, %c0_i32 : i32, i32
  }
}

module attributes {stable_mosaic.version = 11 : i64} {
  func.func @lstm_o2p_kernel(%arg0: i32, %arg1: memref<8x8x128xf32, #tpu.memory_space<vmem>>, %arg2: memref<32x128xf32, #tpu.memory_space<vmem>>, %arg3: memref<32x32xf32, #tpu.memory_space<vmem>>, %arg4: memref<1x32xf32, #tpu.memory_space<vmem>>, %arg5: memref<8x16xf32, #tpu.memory_space<vmem>>, %arg6: memref<8x8x32xf32, #tpu.memory_space<vmem>>, %arg7: memref<8x32xf32, #tpu.memory_space<vmem>>, %arg8: memref<8x32xf32, #tpu.memory_space<vmem>>, %arg9: memref<8x16xf32, #tpu.memory_space<vmem>>, %arg10: memref<8x16xf32, #tpu.memory_space<vmem>>, %arg11: memref<8x16xf32, #tpu.memory_space<vmem>>, %arg12: memref<8x32xf32, #tpu.memory_space<vmem>>, %arg13: memref<8x32xf32, #tpu.memory_space<vmem>>) attributes {dimension_semantics = [#tpu.dimension_semantics<arbitrary>], iteration_bounds = array<i64: 1>, scalar_prefetch = 0 : i64, scratch_operands = 2 : i64, tpu.core_type = #tpu.core_type<tc>, window_params = [{transform_indices = @transform_0, window_bounds = array<i64: 8, 8, 128>}, {pipeline_mode = #tpu.pipeline_mode<synchronous>, transform_indices = @transform_1, window_bounds = array<i64: 32, 128>}, {pipeline_mode = #tpu.pipeline_mode<synchronous>, transform_indices = @transform_2, window_bounds = array<i64: 32, 32>}, {pipeline_mode = #tpu.pipeline_mode<synchronous>, transform_indices = @transform_3, window_bounds = array<i64: 1, 32>}, {pipeline_mode = #tpu.pipeline_mode<synchronous>, transform_indices = @transform_4, window_bounds = array<i64: 8, 16>}, {transform_indices = @transform_5, window_bounds = array<i64: 8, 8, 32>}, {pipeline_mode = #tpu.pipeline_mode<synchronous>, transform_indices = @transform_6, window_bounds = array<i64: 8, 32>}, {pipeline_mode = #tpu.pipeline_mode<synchronous>, transform_indices = @transform_7, window_bounds = array<i64: 8, 32>}, {pipeline_mode = #tpu.pipeline_mode<synchronous>, transform_indices = @transform_8, window_bounds = array<i64: 8, 16>}, {pipeline_mode = #tpu.pipeline_mode<synchronous>, transform_indices = @transform_9, window_bounds = array<i64: 8, 16>}, {pipeline_mode = #tpu.pipeline_mode<synchronous>, transform_indices = @transform_10, window_bounds = array<i64: 8, 16>}]} {
    %c0_i32 = arith.constant 0 : i32
    %0 = arith.cmpi eq, %arg0, %c0_i32 : i32
    %1 = arith.extui %0 : i1 to i32
    %c0_i32_0 = arith.constant 0 : i32
    %2 = arith.cmpi ne, %1, %c0_i32_0 : i32
    scf.if %2 {
      %cst_60 = arith.constant 0.000000e+00 : f32
      %211 = vector.broadcast %cst_60 : f32 to vector<8x32xf32>
      %c0_61 = arith.constant 0 : index
      %c0_62 = arith.constant 0 : index
      %212 = vector.load %arg12[%c0_61, %c0_62] : memref<8x32xf32, #tpu.memory_space<vmem>>, vector<8x32xf32>
      tpu.vector_store %arg12[%c0_61, %c0_62], %211 {strides = array<i32>} : memref<8x32xf32, #tpu.memory_space<vmem>>, vector<8x32xf32>,
      %cst_63 = arith.constant 0.000000e+00 : f32
      %213 = vector.broadcast %cst_63 : f32 to vector<8x32xf32>
      %c0_64 = arith.constant 0 : index
      %c0_65 = arith.constant 0 : index
      %214 = vector.load %arg13[%c0_64, %c0_65] : memref<8x32xf32, #tpu.memory_space<vmem>>, vector<8x32xf32>
      tpu.vector_store %arg13[%c0_64, %c0_65], %213 {strides = array<i32>} : memref<8x32xf32, #tpu.memory_space<vmem>>, vector<8x32xf32>,
    } else {
    }
    %c0 = arith.constant 0 : index
    %c0_1 = arith.constant 0 : index
    %3 = vector.load %arg2[%c0, %c0_1] : memref<32x128xf32, #tpu.memory_space<vmem>>, vector<32x128xf32>
    %c0_2 = arith.constant 0 : index
    %c0_3 = arith.constant 0 : index
    %4 = vector.load %arg12[%c0_2, %c0_3] : memref<8x32xf32, #tpu.memory_space<vmem>>, vector<8x32xf32>
    %c0_4 = arith.constant 0 : index
    %c0_5 = arith.constant 0 : index
    %5 = vector.load %arg13[%c0_4, %c0_5] : memref<8x32xf32, #tpu.memory_space<vmem>>, vector<8x32xf32>
    %c0_i32_6 = arith.constant 0 : i32
    %6 = arith.index_cast %c0_i32_6 : i32 to index
    %c0_7 = arith.constant 0 : index
    %c0_8 = arith.constant 0 : index
    %7 = vector.load %arg1[%6, %c0_7, %c0_8] : memref<8x8x128xf32, #tpu.memory_space<vmem>>, vector<1x8x128xf32>
    %8 = vector.shape_cast %7 : vector<1x8x128xf32> to vector<8x128xf32>
    %cst = arith.constant dense<0.000000e+00> : vector<8x128xf32>
    %9 = tpu.matmul %4, %3, %cst {dimension_numbers = #tpu.dot_dimension_numbers<[1], [0], [0], [1], [0, 0, 1, 1], [], []>} : vector<8x32xf32>, vector<32x128xf32>, vector<8x128xf32> -> vector<8x128xf32>
    %10 = arith.addf %8, %9 : vector<8x128xf32>
    %11 = vector.extract_strided_slice %10 {offsets = [0, 0], sizes = [8, 96], strides = [1, 1]} : vector<8x128xf32> to vector<8x96xf32>
    %12 = arith.negf %11 : vector<8x96xf32>
    %13 = math.exp %12 : vector<8x96xf32>
    %cst_9 = arith.constant 1.000000e+00 : f32
    %14 = vector.broadcast %cst_9 : f32 to vector<8x96xf32>
    %15 = arith.addf %14, %13 : vector<8x96xf32>
    %16 = arith.divf %14, %15 : vector<8x96xf32>
    %17 = vector.extract_strided_slice %10 {offsets = [0, 96], sizes = [8, 32], strides = [1, 1]} : vector<8x128xf32> to vector<8x32xf32>
    %18 = math.tanh %17 : vector<8x32xf32>
    %19 = vector.extract_strided_slice %16 {offsets = [0, 0], sizes = [8, 32], strides = [1, 1]} : vector<8x96xf32> to vector<8x32xf32>
    %20 = vector.extract_strided_slice %16 {offsets = [0, 32], sizes = [8, 32], strides = [1, 1]} : vector<8x96xf32> to vector<8x32xf32>
    %21 = vector.extract_strided_slice %16 {offsets = [0, 64], sizes = [8, 32], strides = [1, 1]} : vector<8x96xf32> to vector<8x32xf32>
    %22 = arith.mulf %20, %5 : vector<8x32xf32>
    %23 = arith.mulf %19, %18 : vector<8x32xf32>
    %24 = arith.addf %22, %23 : vector<8x32xf32>
    %25 = math.tanh %24 : vector<8x32xf32>
    %26 = arith.mulf %21, %25 : vector<8x32xf32>
    %27 = arith.index_cast %c0_i32_6 : i32 to index
    %c0_10 = arith.constant 0 : index
    %c0_11 = arith.constant 0 : index
    %28 = vector.load %arg6[%27, %c0_10, %c0_11] : memref<8x8x32xf32, #tpu.memory_space<vmem>>, vector<1x8x32xf32>
    %29 = vector.shape_cast %28 : vector<1x8x32xf32> to vector<8x32xf32>
    %30 = vector.shape_cast %26 : vector<8x32xf32> to vector<1x8x32xf32>
    tpu.vector_store %arg6[%27, %c0_10, %c0_11], %30 {strides = array<i32>} : memref<8x8x32xf32, #tpu.memory_space<vmem>>, vector<1x8x32xf32>,
    %c1_i32 = arith.constant 1 : i32
    %31 = arith.index_cast %c1_i32 : i32 to index
    %c0_12 = arith.constant 0 : index
    %c0_13 = arith.constant 0 : index
    %32 = vector.load %arg1[%31, %c0_12, %c0_13] : memref<8x8x128xf32, #tpu.memory_space<vmem>>, vector<1x8x128xf32>
    %33 = vector.shape_cast %32 : vector<1x8x128xf32> to vector<8x128xf32>
    %cst_14 = arith.constant dense<0.000000e+00> : vector<8x128xf32>
    %34 = tpu.matmul %26, %3, %cst_14 {dimension_numbers = #tpu.dot_dimension_numbers<[1], [0], [0], [1], [0, 0, 1, 1], [], []>} : vector<8x32xf32>, vector<32x128xf32>, vector<8x128xf32> -> vector<8x128xf32>
    %35 = arith.addf %33, %34 : vector<8x128xf32>
    %36 = vector.extract_strided_slice %35 {offsets = [0, 0], sizes = [8, 96], strides = [1, 1]} : vector<8x128xf32> to vector<8x96xf32>
    %37 = arith.negf %36 : vector<8x96xf32>
    %38 = math.exp %37 : vector<8x96xf32>
    %cst_15 = arith.constant 1.000000e+00 : f32
    %39 = vector.broadcast %cst_15 : f32 to vector<8x96xf32>
    %40 = arith.addf %39, %38 : vector<8x96xf32>
    %41 = arith.divf %39, %40 : vector<8x96xf32>
    %42 = vector.extract_strided_slice %35 {offsets = [0, 96], sizes = [8, 32], strides = [1, 1]} : vector<8x128xf32> to vector<8x32xf32>
    %43 = math.tanh %42 : vector<8x32xf32>
    %44 = vector.extract_strided_slice %41 {offsets = [0, 0], sizes = [8, 32], strides = [1, 1]} : vector<8x96xf32> to vector<8x32xf32>
    %45 = vector.extract_strided_slice %41 {offsets = [0, 32], sizes = [8, 32], strides = [1, 1]} : vector<8x96xf32> to vector<8x32xf32>
    %46 = vector.extract_strided_slice %41 {offsets = [0, 64], sizes = [8, 32], strides = [1, 1]} : vector<8x96xf32> to vector<8x32xf32>
    %47 = arith.mulf %45, %24 : vector<8x32xf32>
    %48 = arith.mulf %44, %43 : vector<8x32xf32>
    %49 = arith.addf %47, %48 : vector<8x32xf32>
    %50 = math.tanh %49 : vector<8x32xf32>
    %51 = arith.mulf %46, %50 : vector<8x32xf32>
    %52 = arith.index_cast %c1_i32 : i32 to index
    %c0_16 = arith.constant 0 : index
    %c0_17 = arith.constant 0 : index
    %53 = vector.load %arg6[%52, %c0_16, %c0_17] : memref<8x8x32xf32, #tpu.memory_space<vmem>>, vector<1x8x32xf32>
    %54 = vector.shape_cast %53 : vector<1x8x32xf32> to vector<8x32xf32>
    %55 = vector.shape_cast %51 : vector<8x32xf32> to vector<1x8x32xf32>
    tpu.vector_store %arg6[%52, %c0_16, %c0_17], %55 {strides = array<i32>} : memref<8x8x32xf32, #tpu.memory_space<vmem>>, vector<1x8x32xf32>,
    %c2_i32 = arith.constant 2 : i32
    %56 = arith.index_cast %c2_i32 : i32 to index
    %c0_18 = arith.constant 0 : index
    %c0_19 = arith.constant 0 : index
    %57 = vector.load %arg1[%56, %c0_18, %c0_19] : memref<8x8x128xf32, #tpu.memory_space<vmem>>, vector<1x8x128xf32>
    %58 = vector.shape_cast %57 : vector<1x8x128xf32> to vector<8x128xf32>
    %cst_20 = arith.constant dense<0.000000e+00> : vector<8x128xf32>
    %59 = tpu.matmul %51, %3, %cst_20 {dimension_numbers = #tpu.dot_dimension_numbers<[1], [0], [0], [1], [0, 0, 1, 1], [], []>} : vector<8x32xf32>, vector<32x128xf32>, vector<8x128xf32> -> vector<8x128xf32>
    %60 = arith.addf %58, %59 : vector<8x128xf32>
    %61 = vector.extract_strided_slice %60 {offsets = [0, 0], sizes = [8, 96], strides = [1, 1]} : vector<8x128xf32> to vector<8x96xf32>
    %62 = arith.negf %61 : vector<8x96xf32>
    %63 = math.exp %62 : vector<8x96xf32>
    %cst_21 = arith.constant 1.000000e+00 : f32
    %64 = vector.broadcast %cst_21 : f32 to vector<8x96xf32>
    %65 = arith.addf %64, %63 : vector<8x96xf32>
    %66 = arith.divf %64, %65 : vector<8x96xf32>
    %67 = vector.extract_strided_slice %60 {offsets = [0, 96], sizes = [8, 32], strides = [1, 1]} : vector<8x128xf32> to vector<8x32xf32>
    %68 = math.tanh %67 : vector<8x32xf32>
    %69 = vector.extract_strided_slice %66 {offsets = [0, 0], sizes = [8, 32], strides = [1, 1]} : vector<8x96xf32> to vector<8x32xf32>
    %70 = vector.extract_strided_slice %66 {offsets = [0, 32], sizes = [8, 32], strides = [1, 1]} : vector<8x96xf32> to vector<8x32xf32>
    %71 = vector.extract_strided_slice %66 {offsets = [0, 64], sizes = [8, 32], strides = [1, 1]} : vector<8x96xf32> to vector<8x32xf32>
    %72 = arith.mulf %70, %49 : vector<8x32xf32>
    %73 = arith.mulf %69, %68 : vector<8x32xf32>
    %74 = arith.addf %72, %73 : vector<8x32xf32>
    %75 = math.tanh %74 : vector<8x32xf32>
    %76 = arith.mulf %71, %75 : vector<8x32xf32>
    %77 = arith.index_cast %c2_i32 : i32 to index
    %c0_22 = arith.constant 0 : index
    %c0_23 = arith.constant 0 : index
    %78 = vector.load %arg6[%77, %c0_22, %c0_23] : memref<8x8x32xf32, #tpu.memory_space<vmem>>, vector<1x8x32xf32>
    %79 = vector.shape_cast %78 : vector<1x8x32xf32> to vector<8x32xf32>
    %80 = vector.shape_cast %76 : vector<8x32xf32> to vector<1x8x32xf32>
    tpu.vector_store %arg6[%77, %c0_22, %c0_23], %80 {strides = array<i32>} : memref<8x8x32xf32, #tpu.memory_space<vmem>>, vector<1x8x32xf32>,
    %c3_i32 = arith.constant 3 : i32
    %81 = arith.index_cast %c3_i32 : i32 to index
    %c0_24 = arith.constant 0 : index
    %c0_25 = arith.constant 0 : index
    %82 = vector.load %arg1[%81, %c0_24, %c0_25] : memref<8x8x128xf32, #tpu.memory_space<vmem>>, vector<1x8x128xf32>
    %83 = vector.shape_cast %82 : vector<1x8x128xf32> to vector<8x128xf32>
    %cst_26 = arith.constant dense<0.000000e+00> : vector<8x128xf32>
    %84 = tpu.matmul %76, %3, %cst_26 {dimension_numbers = #tpu.dot_dimension_numbers<[1], [0], [0], [1], [0, 0, 1, 1], [], []>} : vector<8x32xf32>, vector<32x128xf32>, vector<8x128xf32> -> vector<8x128xf32>
    %85 = arith.addf %83, %84 : vector<8x128xf32>
    %86 = vector.extract_strided_slice %85 {offsets = [0, 0], sizes = [8, 96], strides = [1, 1]} : vector<8x128xf32> to vector<8x96xf32>
    %87 = arith.negf %86 : vector<8x96xf32>
    %88 = math.exp %87 : vector<8x96xf32>
    %cst_27 = arith.constant 1.000000e+00 : f32
    %89 = vector.broadcast %cst_27 : f32 to vector<8x96xf32>
    %90 = arith.addf %89, %88 : vector<8x96xf32>
    %91 = arith.divf %89, %90 : vector<8x96xf32>
    %92 = vector.extract_strided_slice %85 {offsets = [0, 96], sizes = [8, 32], strides = [1, 1]} : vector<8x128xf32> to vector<8x32xf32>
    %93 = math.tanh %92 : vector<8x32xf32>
    %94 = vector.extract_strided_slice %91 {offsets = [0, 0], sizes = [8, 32], strides = [1, 1]} : vector<8x96xf32> to vector<8x32xf32>
    %95 = vector.extract_strided_slice %91 {offsets = [0, 32], sizes = [8, 32], strides = [1, 1]} : vector<8x96xf32> to vector<8x32xf32>
    %96 = vector.extract_strided_slice %91 {offsets = [0, 64], sizes = [8, 32], strides = [1, 1]} : vector<8x96xf32> to vector<8x32xf32>
    %97 = arith.mulf %95, %74 : vector<8x32xf32>
    %98 = arith.mulf %94, %93 : vector<8x32xf32>
    %99 = arith.addf %97, %98 : vector<8x32xf32>
    %100 = math.tanh %99 : vector<8x32xf32>
    %101 = arith.mulf %96, %100 : vector<8x32xf32>
    %102 = arith.index_cast %c3_i32 : i32 to index
    %c0_28 = arith.constant 0 : index
    %c0_29 = arith.constant 0 : index
    %103 = vector.load %arg6[%102, %c0_28, %c0_29] : memref<8x8x32xf32, #tpu.memory_space<vmem>>, vector<1x8x32xf32>
    %104 = vector.shape_cast %103 : vector<1x8x32xf32> to vector<8x32xf32>
    %105 = vector.shape_cast %101 : vector<8x32xf32> to vector<1x8x32xf32>
    tpu.vector_store %arg6[%102, %c0_28, %c0_29], %105 {strides = array<i32>} : memref<8x8x32xf32, #tpu.memory_space<vmem>>, vector<1x8x32xf32>,
    %c4_i32 = arith.constant 4 : i32
    %106 = arith.index_cast %c4_i32 : i32 to index
    %c0_30 = arith.constant 0 : index
    %c0_31 = arith.constant 0 : index
    %107 = vector.load %arg1[%106, %c0_30, %c0_31] : memref<8x8x128xf32, #tpu.memory_space<vmem>>, vector<1x8x128xf32>
    %108 = vector.shape_cast %107 : vector<1x8x128xf32> to vector<8x128xf32>
    %cst_32 = arith.constant dense<0.000000e+00> : vector<8x128xf32>
    %109 = tpu.matmul %101, %3, %cst_32 {dimension_numbers = #tpu.dot_dimension_numbers<[1], [0], [0], [1], [0, 0, 1, 1], [], []>} : vector<8x32xf32>, vector<32x128xf32>, vector<8x128xf32> -> vector<8x128xf32>
    %110 = arith.addf %108, %109 : vector<8x128xf32>
    %111 = vector.extract_strided_slice %110 {offsets = [0, 0], sizes = [8, 96], strides = [1, 1]} : vector<8x128xf32> to vector<8x96xf32>
    %112 = arith.negf %111 : vector<8x96xf32>
    %113 = math.exp %112 : vector<8x96xf32>
    %cst_33 = arith.constant 1.000000e+00 : f32
    %114 = vector.broadcast %cst_33 : f32 to vector<8x96xf32>
    %115 = arith.addf %114, %113 : vector<8x96xf32>
    %116 = arith.divf %114, %115 : vector<8x96xf32>
    %117 = vector.extract_strided_slice %110 {offsets = [0, 96], sizes = [8, 32], strides = [1, 1]} : vector<8x128xf32> to vector<8x32xf32>
    %118 = math.tanh %117 : vector<8x32xf32>
    %119 = vector.extract_strided_slice %116 {offsets = [0, 0], sizes = [8, 32], strides = [1, 1]} : vector<8x96xf32> to vector<8x32xf32>
    %120 = vector.extract_strided_slice %116 {offsets = [0, 32], sizes = [8, 32], strides = [1, 1]} : vector<8x96xf32> to vector<8x32xf32>
    %121 = vector.extract_strided_slice %116 {offsets = [0, 64], sizes = [8, 32], strides = [1, 1]} : vector<8x96xf32> to vector<8x32xf32>
    %122 = arith.mulf %120, %99 : vector<8x32xf32>
    %123 = arith.mulf %119, %118 : vector<8x32xf32>
    %124 = arith.addf %122, %123 : vector<8x32xf32>
    %125 = math.tanh %124 : vector<8x32xf32>
    %126 = arith.mulf %121, %125 : vector<8x32xf32>
    %127 = arith.index_cast %c4_i32 : i32 to index
    %c0_34 = arith.constant 0 : index
    %c0_35 = arith.constant 0 : index
    %128 = vector.load %arg6[%127, %c0_34, %c0_35] : memref<8x8x32xf32, #tpu.memory_space<vmem>>, vector<1x8x32xf32>
    %129 = vector.shape_cast %128 : vector<1x8x32xf32> to vector<8x32xf32>
    %130 = vector.shape_cast %126 : vector<8x32xf32> to vector<1x8x32xf32>
    tpu.vector_store %arg6[%127, %c0_34, %c0_35], %130 {strides = array<i32>} : memref<8x8x32xf32, #tpu.memory_space<vmem>>, vector<1x8x32xf32>,
    %c5_i32 = arith.constant 5 : i32
    %131 = arith.index_cast %c5_i32 : i32 to index
    %c0_36 = arith.constant 0 : index
    %c0_37 = arith.constant 0 : index
    %132 = vector.load %arg1[%131, %c0_36, %c0_37] : memref<8x8x128xf32, #tpu.memory_space<vmem>>, vector<1x8x128xf32>
    %133 = vector.shape_cast %132 : vector<1x8x128xf32> to vector<8x128xf32>
    %cst_38 = arith.constant dense<0.000000e+00> : vector<8x128xf32>
    %134 = tpu.matmul %126, %3, %cst_38 {dimension_numbers = #tpu.dot_dimension_numbers<[1], [0], [0], [1], [0, 0, 1, 1], [], []>} : vector<8x32xf32>, vector<32x128xf32>, vector<8x128xf32> -> vector<8x128xf32>
    %135 = arith.addf %133, %134 : vector<8x128xf32>
    %136 = vector.extract_strided_slice %135 {offsets = [0, 0], sizes = [8, 96], strides = [1, 1]} : vector<8x128xf32> to vector<8x96xf32>
    %137 = arith.negf %136 : vector<8x96xf32>
    %138 = math.exp %137 : vector<8x96xf32>
    %cst_39 = arith.constant 1.000000e+00 : f32
    %139 = vector.broadcast %cst_39 : f32 to vector<8x96xf32>
    %140 = arith.addf %139, %138 : vector<8x96xf32>
    %141 = arith.divf %139, %140 : vector<8x96xf32>
    %142 = vector.extract_strided_slice %135 {offsets = [0, 96], sizes = [8, 32], strides = [1, 1]} : vector<8x128xf32> to vector<8x32xf32>
    %143 = math.tanh %142 : vector<8x32xf32>
    %144 = vector.extract_strided_slice %141 {offsets = [0, 0], sizes = [8, 32], strides = [1, 1]} : vector<8x96xf32> to vector<8x32xf32>
    %145 = vector.extract_strided_slice %141 {offsets = [0, 32], sizes = [8, 32], strides = [1, 1]} : vector<8x96xf32> to vector<8x32xf32>
    %146 = vector.extract_strided_slice %141 {offsets = [0, 64], sizes = [8, 32], strides = [1, 1]} : vector<8x96xf32> to vector<8x32xf32>
    %147 = arith.mulf %145, %124 : vector<8x32xf32>
    %148 = arith.mulf %144, %143 : vector<8x32xf32>
    %149 = arith.addf %147, %148 : vector<8x32xf32>
    %150 = math.tanh %149 : vector<8x32xf32>
    %151 = arith.mulf %146, %150 : vector<8x32xf32>
    %152 = arith.index_cast %c5_i32 : i32 to index
    %c0_40 = arith.constant 0 : index
    %c0_41 = arith.constant 0 : index
    %153 = vector.load %arg6[%152, %c0_40, %c0_41] : memref<8x8x32xf32, #tpu.memory_space<vmem>>, vector<1x8x32xf32>
    %154 = vector.shape_cast %153 : vector<1x8x32xf32> to vector<8x32xf32>
    %155 = vector.shape_cast %151 : vector<8x32xf32> to vector<1x8x32xf32>
    tpu.vector_store %arg6[%152, %c0_40, %c0_41], %155 {strides = array<i32>} : memref<8x8x32xf32, #tpu.memory_space<vmem>>, vector<1x8x32xf32>,
    %c6_i32 = arith.constant 6 : i32
    %156 = arith.index_cast %c6_i32 : i32 to index
    %c0_42 = arith.constant 0 : index
    %c0_43 = arith.constant 0 : index
    %157 = vector.load %arg1[%156, %c0_42, %c0_43] : memref<8x8x128xf32, #tpu.memory_space<vmem>>, vector<1x8x128xf32>
    %158 = vector.shape_cast %157 : vector<1x8x128xf32> to vector<8x128xf32>
    %cst_44 = arith.constant dense<0.000000e+00> : vector<8x128xf32>
    %159 = tpu.matmul %151, %3, %cst_44 {dimension_numbers = #tpu.dot_dimension_numbers<[1], [0], [0], [1], [0, 0, 1, 1], [], []>} : vector<8x32xf32>, vector<32x128xf32>, vector<8x128xf32> -> vector<8x128xf32>
    %160 = arith.addf %158, %159 : vector<8x128xf32>
    %161 = vector.extract_strided_slice %160 {offsets = [0, 0], sizes = [8, 96], strides = [1, 1]} : vector<8x128xf32> to vector<8x96xf32>
    %162 = arith.negf %161 : vector<8x96xf32>
    %163 = math.exp %162 : vector<8x96xf32>
    %cst_45 = arith.constant 1.000000e+00 : f32
    %164 = vector.broadcast %cst_45 : f32 to vector<8x96xf32>
    %165 = arith.addf %164, %163 : vector<8x96xf32>
    %166 = arith.divf %164, %165 : vector<8x96xf32>
    %167 = vector.extract_strided_slice %160 {offsets = [0, 96], sizes = [8, 32], strides = [1, 1]} : vector<8x128xf32> to vector<8x32xf32>
    %168 = math.tanh %167 : vector<8x32xf32>
    %169 = vector.extract_strided_slice %166 {offsets = [0, 0], sizes = [8, 32], strides = [1, 1]} : vector<8x96xf32> to vector<8x32xf32>
    %170 = vector.extract_strided_slice %166 {offsets = [0, 32], sizes = [8, 32], strides = [1, 1]} : vector<8x96xf32> to vector<8x32xf32>
    %171 = vector.extract_strided_slice %166 {offsets = [0, 64], sizes = [8, 32], strides = [1, 1]} : vector<8x96xf32> to vector<8x32xf32>
    %172 = arith.mulf %170, %149 : vector<8x32xf32>
    %173 = arith.mulf %169, %168 : vector<8x32xf32>
    %174 = arith.addf %172, %173 : vector<8x32xf32>
    %175 = math.tanh %174 : vector<8x32xf32>
    %176 = arith.mulf %171, %175 : vector<8x32xf32>
    %177 = arith.index_cast %c6_i32 : i32 to index
    %c0_46 = arith.constant 0 : index
    %c0_47 = arith.constant 0 : index
    %178 = vector.load %arg6[%177, %c0_46, %c0_47] : memref<8x8x32xf32, #tpu.memory_space<vmem>>, vector<1x8x32xf32>
    %179 = vector.shape_cast %178 : vector<1x8x32xf32> to vector<8x32xf32>
    %180 = vector.shape_cast %176 : vector<8x32xf32> to vector<1x8x32xf32>
    tpu.vector_store %arg6[%177, %c0_46, %c0_47], %180 {strides = array<i32>} : memref<8x8x32xf32, #tpu.memory_space<vmem>>, vector<1x8x32xf32>,
    %c7_i32 = arith.constant 7 : i32
    %181 = arith.index_cast %c7_i32 : i32 to index
    %c0_48 = arith.constant 0 : index
    %c0_49 = arith.constant 0 : index
    %182 = vector.load %arg1[%181, %c0_48, %c0_49] : memref<8x8x128xf32, #tpu.memory_space<vmem>>, vector<1x8x128xf32>
    %183 = vector.shape_cast %182 : vector<1x8x128xf32> to vector<8x128xf32>
    %cst_50 = arith.constant dense<0.000000e+00> : vector<8x128xf32>
    %184 = tpu.matmul %176, %3, %cst_50 {dimension_numbers = #tpu.dot_dimension_numbers<[1], [0], [0], [1], [0, 0, 1, 1], [], []>} : vector<8x32xf32>, vector<32x128xf32>, vector<8x128xf32> -> vector<8x128xf32>
    %185 = arith.addf %183, %184 : vector<8x128xf32>
    %186 = vector.extract_strided_slice %185 {offsets = [0, 0], sizes = [8, 96], strides = [1, 1]} : vector<8x128xf32> to vector<8x96xf32>
    %187 = arith.negf %186 : vector<8x96xf32>
    %188 = math.exp %187 : vector<8x96xf32>
    %cst_51 = arith.constant 1.000000e+00 : f32
    %189 = vector.broadcast %cst_51 : f32 to vector<8x96xf32>
    %190 = arith.addf %189, %188 : vector<8x96xf32>
    %191 = arith.divf %189, %190 : vector<8x96xf32>
    %192 = vector.extract_strided_slice %185 {offsets = [0, 96], sizes = [8, 32], strides = [1, 1]} : vector<8x128xf32> to vector<8x32xf32>
    %193 = math.tanh %192 : vector<8x32xf32>
    %194 = vector.extract_strided_slice %191 {offsets = [0, 0], sizes = [8, 32], strides = [1, 1]} : vector<8x96xf32> to vector<8x32xf32>
    %195 = vector.extract_strided_slice %191 {offsets = [0, 32], sizes = [8, 32], strides = [1, 1]} : vector<8x96xf32> to vector<8x32xf32>
    %196 = vector.extract_strided_slice %191 {offsets = [0, 64], sizes = [8, 32], strides = [1, 1]} : vector<8x96xf32> to vector<8x32xf32>
    %197 = arith.mulf %195, %174 : vector<8x32xf32>
    %198 = arith.mulf %194, %193 : vector<8x32xf32>
    %199 = arith.addf %197, %198 : vector<8x32xf32>
    %200 = math.tanh %199 : vector<8x32xf32>
    %201 = arith.mulf %196, %200 : vector<8x32xf32>
    %202 = arith.index_cast %c7_i32 : i32 to index
    %c0_52 = arith.constant 0 : index
    %c0_53 = arith.constant 0 : index
    %203 = vector.load %arg6[%202, %c0_52, %c0_53] : memref<8x8x32xf32, #tpu.memory_space<vmem>>, vector<1x8x32xf32>
    %204 = vector.shape_cast %203 : vector<1x8x32xf32> to vector<8x32xf32>
    %205 = vector.shape_cast %201 : vector<8x32xf32> to vector<1x8x32xf32>
    tpu.vector_store %arg6[%202, %c0_52, %c0_53], %205 {strides = array<i32>} : memref<8x8x32xf32, #tpu.memory_space<vmem>>, vector<1x8x32xf32>,
    %c8_i32 = arith.constant 8 : i32
    %c0_54 = arith.constant 0 : index
    %c0_55 = arith.constant 0 : index
    %206 = vector.load %arg12[%c0_54, %c0_55] : memref<8x32xf32, #tpu.memory_space<vmem>>, vector<8x32xf32>
    tpu.vector_store %arg12[%c0_54, %c0_55], %201 {strides = array<i32>} : memref<8x32xf32, #tpu.memory_space<vmem>>, vector<8x32xf32>,
    %c0_56 = arith.constant 0 : index
    %c0_57 = arith.constant 0 : index
    %207 = vector.load %arg13[%c0_56, %c0_57] : memref<8x32xf32, #tpu.memory_space<vmem>>, vector<8x32xf32>
    tpu.vector_store %arg13[%c0_56, %c0_57], %199 {strides = array<i32>} : memref<8x32xf32, #tpu.memory_space<vmem>>, vector<8x32xf32>,
    %c0_i32_58 = arith.constant 0 : i32
    %208 = arith.cmpi eq, %arg0, %c0_i32_58 : i32
    %209 = arith.extui %208 : i1 to i32
    %c0_i32_59 = arith.constant 0 : i32
    %210 = arith.cmpi ne, %209, %c0_i32_59 : i32
    scf.if %210 {
      %c0_60 = arith.constant 0 : index
      %c0_61 = arith.constant 0 : index
      %211 = vector.load %arg7[%c0_60, %c0_61] : memref<8x32xf32, #tpu.memory_space<vmem>>, vector<8x32xf32>
      tpu.vector_store %arg7[%c0_60, %c0_61], %201 {strides = array<i32>} : memref<8x32xf32, #tpu.memory_space<vmem>>, vector<8x32xf32>,
      %c0_62 = arith.constant 0 : index
      %c0_63 = arith.constant 0 : index
      %212 = vector.load %arg8[%c0_62, %c0_63] : memref<8x32xf32, #tpu.memory_space<vmem>>, vector<8x32xf32>
      tpu.vector_store %arg8[%c0_62, %c0_63], %199 {strides = array<i32>} : memref<8x32xf32, #tpu.memory_space<vmem>>, vector<8x32xf32>,
      %c0_64 = arith.constant 0 : index
      %c0_65 = arith.constant 0 : index
      %213 = vector.load %arg3[%c0_64, %c0_65] : memref<32x32xf32, #tpu.memory_space<vmem>>, vector<32x32xf32>
      %cst_66 = arith.constant dense<0.000000e+00> : vector<8x32xf32>
      %214 = tpu.matmul %201, %213, %cst_66 {dimension_numbers = #tpu.dot_dimension_numbers<[1], [0], [0], [1], [0, 0, 1, 1], [], []>} : vector<8x32xf32>, vector<32x32xf32>, vector<8x32xf32> -> vector<8x32xf32>
      %c0_67 = arith.constant 0 : index
      %c0_68 = arith.constant 0 : index
      %215 = vector.load %arg4[%c0_67, %c0_68] : memref<1x32xf32, #tpu.memory_space<vmem>>, vector<1x32xf32>
      %216 = vector.broadcast %215 : vector<1x32xf32> to vector<8x32xf32>
      %217 = arith.addf %214, %216 : vector<8x32xf32>
      %218 = vector.extract_strided_slice %217 {offsets = [0, 0], sizes = [8, 16], strides = [1, 1]} : vector<8x32xf32> to vector<8x16xf32>
      %219 = vector.extract_strided_slice %217 {offsets = [0, 16], sizes = [8, 16], strides = [1, 1]} : vector<8x32xf32> to vector<8x16xf32>
      %c0_69 = arith.constant 0 : index
      %c0_70 = arith.constant 0 : index
      %220 = vector.load %arg9[%c0_69, %c0_70] : memref<8x16xf32, #tpu.memory_space<vmem>>, vector<8x16xf32>
      tpu.vector_store %arg9[%c0_69, %c0_70], %218 {strides = array<i32>} : memref<8x16xf32, #tpu.memory_space<vmem>>, vector<8x16xf32>,
      %c0_71 = arith.constant 0 : index
      %c0_72 = arith.constant 0 : index
      %221 = vector.load %arg10[%c0_71, %c0_72] : memref<8x16xf32, #tpu.memory_space<vmem>>, vector<8x16xf32>
      tpu.vector_store %arg10[%c0_71, %c0_72], %219 {strides = array<i32>} : memref<8x16xf32, #tpu.memory_space<vmem>>, vector<8x16xf32>,
      %c0_73 = arith.constant 0 : index
      %c0_74 = arith.constant 0 : index
      %222 = vector.load %arg5[%c0_73, %c0_74] : memref<8x16xf32, #tpu.memory_space<vmem>>, vector<8x16xf32>
      %cst_75 = arith.constant 5.000000e-01 : f32
      %223 = vector.broadcast %cst_75 : f32 to vector<8x16xf32>
      %224 = arith.mulf %219, %223 : vector<8x16xf32>
      %225 = math.exp %224 : vector<8x16xf32>
      %226 = arith.mulf %222, %225 : vector<8x16xf32>
      %227 = arith.addf %218, %226 : vector<8x16xf32>
      %c0_76 = arith.constant 0 : index
      %c0_77 = arith.constant 0 : index
      %228 = vector.load %arg11[%c0_76, %c0_77] : memref<8x16xf32, #tpu.memory_space<vmem>>, vector<8x16xf32>
      tpu.vector_store %arg11[%c0_76, %c0_77], %227 {strides = array<i32>} : memref<8x16xf32, #tpu.memory_space<vmem>>, vector<8x16xf32>,
    } else {
    }
    return
  }
  func.func @transform_0(%arg0: i32) -> (i32, i32, i32) {
    %c0_i32 = arith.constant 0 : i32
    %c0_i32_0 = arith.constant 0 : i32
    %c0_i32_1 = arith.constant 0 : i32
    return %arg0, %c0_i32, %c0_i32_0 : i32, i32, i32
  }
  func.func @transform_1(%arg0: i32) -> (i32, i32) {
    %c0_i32 = arith.constant 0 : i32
    %c0_i32_0 = arith.constant 0 : i32
    %c0_i32_1 = arith.constant 0 : i32
    return %c0_i32, %c0_i32_0 : i32, i32
  }
  func.func @transform_2(%arg0: i32) -> (i32, i32) {
    %c0_i32 = arith.constant 0 : i32
    %c0_i32_0 = arith.constant 0 : i32
    %c0_i32_1 = arith.constant 0 : i32
    return %c0_i32, %c0_i32_0 : i32, i32
  }
  func.func @transform_3(%arg0: i32) -> (i32, i32) {
    %c0_i32 = arith.constant 0 : i32
    %c0_i32_0 = arith.constant 0 : i32
    %c0_i32_1 = arith.constant 0 : i32
    return %c0_i32, %c0_i32_0 : i32, i32
  }
  func.func @transform_4(%arg0: i32) -> (i32, i32) {
    %c0_i32 = arith.constant 0 : i32
    %c0_i32_0 = arith.constant 0 : i32
    %c0_i32_1 = arith.constant 0 : i32
    return %c0_i32, %c0_i32_0 : i32, i32
  }
  func.func @transform_5(%arg0: i32) -> (i32, i32, i32) {
    %c0_i32 = arith.constant 0 : i32
    %c0_i32_0 = arith.constant 0 : i32
    %c0_i32_1 = arith.constant 0 : i32
    return %arg0, %c0_i32, %c0_i32_0 : i32, i32, i32
  }
  func.func @transform_6(%arg0: i32) -> (i32, i32) {
    %c0_i32 = arith.constant 0 : i32
    %c0_i32_0 = arith.constant 0 : i32
    %c0_i32_1 = arith.constant 0 : i32
    return %c0_i32, %c0_i32_0 : i32, i32
  }
  func.func @transform_7(%arg0: i32) -> (i32, i32) {
    %c0_i32 = arith.constant 0 : i32
    %c0_i32_0 = arith.constant 0 : i32
    %c0_i32_1 = arith.constant 0 : i32
    return %c0_i32, %c0_i32_0 : i32, i32
  }
  func.func @transform_8(%arg0: i32) -> (i32, i32) {
    %c0_i32 = arith.constant 0 : i32
    %c0_i32_0 = arith.constant 0 : i32
    %c0_i32_1 = arith.constant 0 : i32
    return %c0_i32, %c0_i32_0 : i32, i32
  }
  func.func @transform_9(%arg0: i32) -> (i32, i32) {
    %c0_i32 = arith.constant 0 : i32
    %c0_i32_0 = arith.constant 0 : i32
    %c0_i32_1 = arith.constant 0 : i32
    return %c0_i32, %c0_i32_0 : i32, i32
  }
  func.func @transform_10(%arg0: i32) -> (i32, i32) {
    %c0_i32 = arith.constant 0 : i32
    %c0_i32_0 = arith.constant 0 : i32
    %c0_i32_1 = arith.constant 0 : i32
    return %c0_i32, %c0_i32_0 : i32, i32
  }
}

</mosaic_0001>

<bundles_post_ra>
// kernel: vae_rnn_encoder_forward.2
= control target key start
LH: loop header
LB: loop body
LE: loop exit
PB: predicated region body
PF: predicated region fallthrough
CT: control target
= control target key end

     0   :  { %vm28_vm0 = vcmask 130048   ;;  %s206_s1 = inlined_call_operand.vmem [shape: f32[16,128], index: 1, kind: input, shape index: {}]   ;;  %s207_s0 = inlined_call_operand.vmem [shape: f32[64,16], index: 0, kind: input, shape index: {}]   ;;  %s208_s2 = inlined_call_operand.vmem [shape: f32[1,128], index: 2, kind: input, shape index: {}]   ;;  %s209_s3 = inlined_call_operand.vmem [shape: f32[64,128], index: 3, kind: output, shape index: {}]  }
   0x1   :  { %v23_v0 = vld [vmem:[%s206_s1 + $0x8] sm:$0xff]  ;;  %v22_v1 = vld [vmem:[%s206_s1] sm:$0xff]  ;;  %v20_v3 = vld [vmem:[%s207_s0 + $0x30] sm:$0xff] }
   0x2   :  { %115 = vmatpush.msra.mxu2 %v23_v0  ;;  %116 = vmatpush.msra.mxu3 %v23_v0  ;;  %v18_v2 = vld [vmem:[%s207_s0 + $0x20] sm:$0xff]  ;;  %v16_v5 = vld [vmem:[%s207_s0 + $0x10] sm:$0xff]  ;;  %v19_v6 = vld [vmem:[%s207_s0 + $0x28] sm:$0xff] }
   0x3   :  { %67 = vmatpush.msra.mxu0 %v23_v0  ;;  %114 = vmatpush.msra.mxu1 %v23_v0  ;;  %v14_v4 = vld [vmem:[%s207_s0] sm:$0xff]  ;;  %v21_v7 = vld [vmem:[%s207_s0 + $0x38] sm:$0xff]  ;;  %v15_v8 = vld [vmem:[%s207_s0 + $0x8] sm:$0xff] }
   0x4   :  { %118 = vmatpush.msra.mxu2 %v22_v1  ;;  %119 = vmatpush.msra.mxu3 %v22_v1  ;;  %v17_v9 = vld [vmem:[%s207_s0 + $0x18] sm:$0xff]  ;;  %v120_v10 = vld [vmem:[%s208_s2] ss:$0 sm:$0xff] }
   0x5   :  { %110 = vmatmul.msk.f32.vlgmr.msra.gmra.mxu2 %vm28_vm0, %v18_v2  ;;  %112 = vmatmul.msk.f32.vlgmr.msra.gmra.mxu3 %vm28_vm0, %v20_v3 }
   0x6   :  { %68 = vmatpush.msra.mxu0 %v22_v1  ;;  %117 = vmatpush.msra.mxu1 %v22_v1 }
   0x7   :  { %106 = vmatmul.msk.f32.vlgmr.msra.gmra.mxu0 %vm28_vm0, %v14_v4  ;;  %108 = vmatmul.msk.f32.vlgmr.msra.gmra.mxu1 %vm28_vm0, %v16_v5 }
   0xd   :  { %111 = vmatmul.msk.f32.gmra.mxu2 %vm28_vm0, %v19_v6  ;;  %113 = vmatmul.msk.f32.gmra.mxu3 %vm28_vm0, %v21_v7 }
   0xf   :  { %107 = vmatmul.msk.f32.gmra.mxu0 %vm28_vm0, %v15_v8  ;;  %109 = vmatmul.msk.f32.gmra.mxu1 %vm28_vm0, %v17_v9 }
  0x84   :  { %v70_v11 = vpop.f32.mrf.mxu0  ;;  %v76_v12 = vpop.f32.mrf.mxu1 }
  0x85   :  { %v71_v13 = vadd.f32 %v120_v10, %v70_v11  ;;  %v77_v14 = vadd.f32 %v120_v10, %v76_v12 }
  0x87   :  { %94 = vst [vmem:[%s209_s3] sm:$0xff] %v71_v13 }
  0x88   :  { %96 = vst [vmem:[%s209_s3 + $0x10] sm:$0xff] %v77_v14  ;;  %v82_v15 = vpop.f32.mrf.mxu2  ;;  %v88_v16 = vpop.f32.mrf.mxu3 }
  0x89   :  { %v83_v17 = vadd.f32 %v120_v10, %v82_v15  ;;  %v89_v18 = vadd.f32 %v120_v10, %v88_v16 }
  0x8b   :  { %98 = vst [vmem:[%s209_s3 + $0x20] sm:$0xff] %v83_v17 }
  0x8c   :  { %100 = vst [vmem:[%s209_s3 + $0x30] sm:$0xff] %v89_v18  ;;  %v73_v19 = vpop.f32.mrf.mxu0  ;;  %v79_v20 = vpop.f32.mrf.mxu1 }
  0x8d   :  { %v74_v21 = vadd.f32 %v120_v10, %v73_v19  ;;  %v80_v22 = vadd.f32 %v120_v10, %v79_v20 }
  0x8f   :  { %95 = vst [vmem:[%s209_s3 + $0x8] sm:$0xff] %v74_v21 }
  0x90   :  { %97 = vst [vmem:[%s209_s3 + $0x18] sm:$0xff] %v80_v22  ;;  %v85_v23 = vpop.f32.mrf.mxu2  ;;  %v91_v24 = vpop.f32.mrf.mxu3 }
  0x91   :  { %v86_v25 = vadd.f32 %v120_v10, %v85_v23  ;;  %v92_v26 = vadd.f32 %v120_v10, %v91_v24 }
  0x93   :  { %99 = vst [vmem:[%s209_s3 + $0x28] sm:$0xff] %v86_v25 }
  0x94   :  { %101 = vst [vmem:[%s209_s3 + $0x38] sm:$0xff] %v92_v26 }

// kernel: vae_rnn_encoder_forward.3
= control target key start
LH: loop header
LB: loop body
LE: loop exit
PB: predicated region body
PF: predicated region fallthrough
CT: control target
= control target key end

     0   :  { %16 = vsyncpa [#allocation5], 0  ;;  %s1201_s0 = inlined_call_operand.vmem [shape: f32[8,8,128], index: 0, kind: input, shape index: {}]   ;;  %s1202_s1 = inlined_call_operand.vmem [shape: f32[32,128], index: 1, kind: input, shape index: {}]   ;;  %s1203_s2 = inlined_call_operand.vmem [shape: f32[32,32], index: 2, kind: input, shape index: {}]   ;;  %s1204_s3 = inlined_call_operand.vmem [shape: f32[1,32], index: 3, kind: input, shape index: {}]   ;;  %s1205_s4 = inlined_call_operand.vmem [shape: f32[8,16], index: 4, kind: input, shape index: {}]   ;;  %s1206_s5 = inlined_call_operand.hbm [shape: f32[8,8,32], index: 5, kind: output, shape index: {0}]   ;;  %s1207_s6 = inlined_call_operand.hbm [shape: f32[8,32], index: 6, kind: output, shape index: {1}]   ;;  %s1208_s7 = inlined_call_operand.hbm [shape: f32[8,32], index: 7, kind: output, shape index: {2}]   ;;  %s1209_s8 = inlined_call_operand.hbm [shape: f32[8,16], index: 8, kind: output, shape index: {3}]   ;;  %s1210_s9 = inlined_call_operand.hbm [shape: f32[8,16], index: 9, kind: output, shape index: {4}]   ;;  %s1211_s10 = inlined_call_operand.hbm [shape: f32[8,16], index: 10, kind: output, shape index: {5}]  }
   0x1   :  { %17 = vsyncpa [#allocation7], 0 }
   0x2   :  { %18 = vsyncpa [#allocation10], 0  ;;  %v40_v0 = vld [vmem:[%s1202_s1 + $0x18] sm:$0xff]  ;;  %v39_v1 = vld [vmem:[%s1202_s1 + $0x10] sm:$0xff]  ;;  %vm34_vm0 = vcmask 261120   ;;  %v1002_v2 = vmov 0.0  }
   0x3   :  { %60 = vmatpush.msra.mxu0 %v40_v0  ;;  %35 = vst.msk [vmem:[#allocation2] sm:$0xff] %vm34_vm0, %v1002_v2  ;;  %131 = vmatpush.msra.mxu1 %v40_v0  ;;  %v38_v3 = vld [vmem:[%s1202_s1 + $0x8] sm:$0xff] }
   0x4   :  { %36 = vst.msk [vmem:[#allocation3] sm:$0xff] %vm34_vm0, %v1002_v2  ;;  %199 = vmatpush.msra.mxu2 %v40_v0  ;;  %267 = vmatpush.msra.mxu3 %v40_v0 }
   0x5   :  { %19 = vsyncpa [#allocation13], 0  ;;  %61 = vmatpush.msra.mxu0 %v39_v1  ;;  %132 = vmatpush.msra.mxu1 %v39_v1  ;;  %v37_v4 = vld [vmem:[%s1202_s1] sm:$0xff]  ;;  %s1003_s22 = smov 32   ;;  %s1004_s23 = smov 64   ;;  %v748_v34 = vld [vmem:[%s1201_s0 + $0x8] sm:$0xff] }
   0x6   :  { %200 = vmatpush.msra.mxu2 %v39_v1  ;;  %268 = vmatpush.msra.mxu3 %v39_v1  ;;  %v43_v6 = vld [vmem:[%s1201_s0] sm:$0xff]  ;;  %v751_v60 = vld [vmem:[%s1201_s0 + $0x10] sm:$0xff]  ;;  %s1007_s27 = smov [#allocation6]   ;;  %s670_s11 = sshll.u32 %s1207_s6, 4  ;;  %s671_s11 = int_to_ptr.hbm [resolvable:$true] %s670_s11 }
   0x7   :  { %62 = vmatpush.msra.mxu0 %v38_v3  ;;  %133 = vmatpush.msra.mxu1 %v38_v3  ;;  %s668_s28 = sshll.u32 %s1007_s27, 4  ;;  %s692_s15 = sshll.u32 %s1209_s8, 4  ;;  %s669_s28 = int_to_ptr.vmem [resolvable:$true] %s668_s28  ;;  %s693_s15 = int_to_ptr.hbm [resolvable:$true] %s692_s15 }
   0x8   :  { %201 = vmatpush.msra.mxu2 %v38_v3  ;;  %269 = vmatpush.msra.mxu3 %v38_v3  ;;  %s1009_s18 = smov [#allocation4]   ;;  %s1010_s6 = smov 128  }
   0x9   :  { %63 = vmatpush.msra.mxu0 %v37_v4  ;;  %134 = vmatpush.msra.mxu1 %v37_v4  ;;  %s654_s19 = sshll.u32 %s1009_s18, 4  ;;  %s1011_s20 = smov 8   ;;  %s655_s19 = int_to_ptr.vmem [resolvable:$true] %s654_s19 }
   0xa   :  { %v41_v5 = vld [vmem:[#allocation2] sm:$0xff]  ;;  %202 = vmatpush.msra.mxu2 %v37_v4  ;;  %270 = vmatpush.msra.mxu3 %v37_v4  ;;  %s1012_s1 = smov [#allocation8]   ;;  %s681_s25 = sshll.u32 %s1208_s7, 4  ;;  %s682_s25 = int_to_ptr.hbm [resolvable:$true] %s681_s25 }
   0xb   :  { %746 = vmatmul.msk.f32.vlgmr.msra.gmra.mxu0 %vm34_vm0, %v41_v5  ;;  %403 = vmatpush.msrb.mxu1 %v40_v0  ;;  %v42_v10 = vld [vmem:[#allocation3] sm:$0xff]  ;;  %s679_s21 = sshll.u32 %s1012_s1, 4  ;;  %s1013_s26 = smov [#allocation11]   ;;  %s680_s21 = int_to_ptr.vmem [resolvable:$true] %s679_s21 }
   0xc   :  { %335 = vmatpush.msrb.mxu0 %v40_v0  ;;  %471 = vmatpush.msrb.mxu2 %v40_v0  ;;  %s703_s27 = sshll.u32 %s1210_s9, 4  ;;  %s1014_s7 = smov [#allocation12]   ;;  %s704_s27 = int_to_ptr.hbm [resolvable:$true] %s703_s27 }
   0xd   :  { %404 = vmatpush.msrb.mxu1 %v39_v1  ;;  %539 = vmatpush.msrb.mxu3 %v40_v0  ;;  %s712_s29 = sshll.u32 %s1014_s7, 4  ;;  %s713_s29 = int_to_ptr.vmem [resolvable:$true] %s712_s29 }
   0xe   :  { %336 = vmatpush.msrb.mxu0 %v39_v1  ;;  %472 = vmatpush.msrb.mxu2 %v39_v1 }
   0xf   :  { %405 = vmatpush.msrb.mxu1 %v38_v3  ;;  %540 = vmatpush.msrb.mxu3 %v39_v1 }
  0x10   :  { %337 = vmatpush.msrb.mxu0 %v38_v3  ;;  %473 = vmatpush.msrb.mxu2 %v38_v3 }
  0x11   :  { %406 = vmatpush.msrb.mxu1 %v37_v4  ;;  %541 = vmatpush.msrb.mxu3 %v38_v3 }
  0x12   :  { %338 = vmatpush.msrb.mxu0 %v37_v4  ;;  %474 = vmatpush.msrb.mxu2 %v37_v4 }
  0x13   :  { %542 = vmatpush.msrb.mxu3 %v37_v4 }
  0x88   :  { %v65_v7 = vpop.f32.mrf.mxu0 }
  0x89   :  { %v68_v8 = vadd.f32 %v65_v7, %v43_v6 }
  0x8b   :  { %784 = vtanh.f32 %v68_v8  ;;  %v747_v11 = vmul.f32 -1.442695, %v68_v8 }
  0x8d   :  { %786 = vpow2.f32 %v747_v11 }
  0x91   :  { %v785_v9 = vpop.eup %784 }
  0x92   :  { %95 = vrot.lane.b32.xlu0 %v785_v9, %s1003_s22 }
  0x93   :  { %v787_v12 = vpop.eup %786 }
  0x94   :  { %v72_v13 = vadd.f32 1.0, %v787_v12 }
  0x96   :  { %788 = vrcp.f32 %v72_v13  ;;  %v84_v19 = vand.u32 2147483648, %v72_v13  ;;  %vm78_vm2 = vweird.f32 %v72_v13  ;;  %v82_v20 = vand.u32 2147483647, %v72_v13 }
  0x98   :  { %v85_v22 = vor.u32 1.1754944e-38, %v84_v19  ;;  %vm83_vm4 = vcmp.eq.f32.partialorder %v82_v20, 8.507059e+37 }
  0x9a   :  { %90 = vrot.lane.b32.xlu0 %v42_v10, %s1003_s22 }
  0x9c   :  { %v789_v14 = vpop.eup %788 }
  0x9d   :  { %v74_v15 = vmul.f32 %v789_v14, %v72_v13  ;;  %vm79_vm1 = vweird.f32 %v789_v14 }
  0x9e   :  { %vm80_vm3 = vmor %vm78_vm2, %vm79_vm1 }
  0x9f   :  { %v75_v16 = vsub.f32 1.0, %v74_v15 }
  0xa1   :  { %v76_v17 = vmul.f32 %v789_v14, %v75_v16 }
  0xa3   :  { %v77_v18 = vadd.f32 %v789_v14, %v76_v17 }
  0xa5   :  { %v81_v21 = vsel %vm80_vm3, %v789_v14, %v77_v18 }
  0xa6   :  { %v86_v24 = vsel %vm83_vm4, %v85_v22, %v81_v21  ;;  %v754_v22 = vld [vmem:[%s1201_s0 + $0x18] sm:$0xff] }
 0x104   :  { %v96_v23 = vpop.permute.xlu0 %95 }
 0x105   :  { %v98_v25 = vmul.f32 %v96_v23, %v86_v24 }
 0x107   :  { %100 = vrot.lane.b32.xlu1 %v98_v25, %s1003_s22 }
 0x10c   :  { %v91_v26 = vpop.permute.xlu0 %90 }
 0x10d   :  { %v93_v27 = vmul.f32 %v91_v26, %v86_v24 }
 0x179   :  { %v101_v28 = vpop.permute.xlu1 %100 }
 0x17a   :  { %v103_v29 = vadd.f32 %v101_v28, %v93_v27 }
 0x17c   :  { %790 = vtanh.f32 %v103_v29 }
 0x182   :  { %v791_v30 = vpop.eup %790 }
 0x183   :  { %106 = vrot.lane.b32.xlu1 %v791_v30, %s1003_s22 }
 0x1f5   :  { %v107_v31 = vpop.permute.xlu1 %106 }
 0x1f6   :  { %v109_v32 = vmul.f32 %v107_v31, %v86_v24 }
 0x1f8   :  { %111 = vrot.lane.b32.xlu2 %v109_v32, %s1004_s23 }
 0x252   :  { %v112_v33 = vpop.permute.xlu2 %111 }
 0x253   :  { %114 = vst.msk [vmem:[#allocation4] sm:$0xff] %vm34_vm0, %v112_v33  ;;  %749 = vmatmul.msk.f32.vlgmr.msra.gmra.mxu1 %vm34_vm0, %v112_v33 }
 0x2d0   :  { %v136_v35 = vpop.f32.mrf.mxu1 }
 0x2d1   :  { %v139_v36 = vadd.f32 %v748_v34, %v136_v35 }
 0x2d3   :  { %792 = vtanh.f32 %v139_v36  ;;  %v750_v38 = vmul.f32 -1.442695, %v139_v36 }
 0x2d5   :  { %794 = vpow2.f32 %v750_v38 }
 0x2d9   :  { %v793_v37 = vpop.eup %792 }
 0x2da   :  { %162 = vrot.lane.b32.xlu2 %v793_v37, %s1003_s22 }
 0x2db   :  { %v795_v39 = vpop.eup %794 }
 0x2dc   :  { %v143_v40 = vadd.f32 1.0, %v795_v39 }
 0x2de   :  { %796 = vrcp.f32 %v143_v40  ;;  %v155_v46 = vand.u32 2147483648, %v143_v40  ;;  %vm149_vm6 = vweird.f32 %v143_v40  ;;  %v153_v47 = vand.u32 2147483647, %v143_v40 }
 0x2e0   :  { %v156_v49 = vor.u32 1.1754944e-38, %v155_v46  ;;  %vm154_vm8 = vcmp.eq.f32.partialorder %v153_v47, 8.507059e+37 }
 0x2e4   :  { %v797_v41 = vpop.eup %796 }
 0x2e5   :  { %v145_v42 = vmul.f32 %v797_v41, %v143_v40  ;;  %vm150_vm5 = vweird.f32 %v797_v41 }
 0x2e6   :  { %vm151_vm7 = vmor %vm149_vm6, %vm150_vm5 }
 0x2e7   :  { %v146_v43 = vsub.f32 1.0, %v145_v42 }
 0x2e9   :  { %v147_v44 = vmul.f32 %v797_v41, %v146_v43 }
 0x2eb   :  { %v148_v45 = vadd.f32 %v797_v41, %v147_v44 }
 0x2ed   :  { %v152_v48 = vsel %vm151_vm7, %v797_v41, %v148_v45 }
 0x2ee   :  { %v157_v51 = vsel %vm154_vm8, %v156_v49, %v152_v48  ;;  %v757_v48 = vld [vmem:[%s1201_s0 + $0x20] sm:$0xff] }
 0x2ef   :  { %v160_v53 = vmul.f32 %v157_v51, %v103_v29 }
 0x334   :  { %v163_v50 = vpop.permute.xlu2 %162 }
 0x335   :  { %v165_v52 = vmul.f32 %v163_v50, %v157_v51 }
 0x337   :  { %167 = vrot.lane.b32.xlu0 %v165_v52, %s1003_s22 }
 0x3a9   :  { %v168_v54 = vpop.permute.xlu0 %167 }
 0x3aa   :  { %v170_v55 = vadd.f32 %v168_v54, %v160_v53 }
 0x3ac   :  { %798 = vtanh.f32 %v170_v55 }
 0x3b2   :  { %v799_v56 = vpop.eup %798 }
 0x3b3   :  { %173 = vrot.lane.b32.xlu1 %v799_v56, %s1003_s22 }
 0x425   :  { %v174_v57 = vpop.permute.xlu1 %173 }
 0x426   :  { %v176_v58 = vmul.f32 %v174_v57, %v157_v51 }
 0x428   :  { %178 = vrot.lane.b32.xlu2 %v176_v58, %s1004_s23 }
 0x482   :  { %v179_v59 = vpop.permute.xlu2 %178 }
 0x483   :  { %182 = vst.msk [vmem:[#allocation4 + $0x8] sm:$0xff] %vm34_vm0, %v179_v59  ;;  %752 = vmatmul.msk.f32.vlgmr.msra.gmra.mxu2 %vm34_vm0, %v179_v59 }
 0x506   :  { %v204_v61 = vpop.f32.mrf.mxu2 }
 0x507   :  { %v207_v62 = vadd.f32 %v751_v60, %v204_v61 }
 0x509   :  { %800 = vtanh.f32 %v207_v62  ;;  %v753_v0 = vmul.f32 -1.442695, %v207_v62 }
 0x50b   :  { %802 = vpow2.f32 %v753_v0 }
 0x50f   :  { %v801_v63 = vpop.eup %800 }
 0x510   :  { %230 = vrot.lane.b32.xlu0 %v801_v63, %s1003_s22 }
 0x511   :  { %v803_v1 = vpop.eup %802 }
 0x512   :  { %v211_v2 = vadd.f32 1.0, %v803_v1 }
 0x514   :  { %804 = vrcp.f32 %v211_v2  ;;  %v223_v8 = vand.u32 2147483648, %v211_v2  ;;  %vm217_vm10 = vweird.f32 %v211_v2  ;;  %v221_v9 = vand.u32 2147483647, %v211_v2 }
 0x516   :  { %v224_v11 = vor.u32 1.1754944e-38, %v223_v8  ;;  %vm222_vm12 = vcmp.eq.f32.partialorder %v221_v9, 8.507059e+37 }
 0x51a   :  { %v805_v3 = vpop.eup %804 }
 0x51b   :  { %v213_v4 = vmul.f32 %v805_v3, %v211_v2  ;;  %vm218_vm9 = vweird.f32 %v805_v3 }
 0x51c   :  { %vm219_vm11 = vmor %vm217_vm10, %vm218_vm9 }
 0x51d   :  { %v214_v5 = vsub.f32 1.0, %v213_v4 }
 0x51f   :  { %v215_v6 = vmul.f32 %v805_v3, %v214_v5 }
 0x521   :  { %v216_v7 = vadd.f32 %v805_v3, %v215_v6 }
 0x523   :  { %v220_v10 = vsel %vm219_vm11, %v805_v3, %v216_v7 }
 0x524   :  { %v225_v13 = vsel %vm222_vm12, %v224_v11, %v220_v10  ;;  %v760_v10 = vld [vmem:[%s1201_s0 + $0x28] sm:$0xff] }
 0x525   :  { %v228_v15 = vmul.f32 %v225_v13, %v170_v55 }
 0x582   :  { %v231_v12 = vpop.permute.xlu0 %230 }
 0x583   :  { %v233_v14 = vmul.f32 %v231_v12, %v225_v13 }
 0x585   :  { %235 = vrot.lane.b32.xlu1 %v233_v14, %s1003_s22 }
 0x5f7   :  { %v236_v16 = vpop.permute.xlu1 %235 }
 0x5f8   :  { %v238_v17 = vadd.f32 %v236_v16, %v228_v15 }
 0x5fa   :  { %806 = vtanh.f32 %v238_v17 }
 0x600   :  { %v807_v18 = vpop.eup %806 }
 0x601   :  { %241 = vrot.lane.b32.xlu2 %v807_v18, %s1003_s22 }
 0x65b   :  { %v242_v19 = vpop.permute.xlu2 %241 }
 0x65c   :  { %v244_v20 = vmul.f32 %v242_v19, %v225_v13 }
 0x65e   :  { %246 = vrot.lane.b32.xlu0 %v244_v20, %s1004_s23 }
 0x6d0   :  { %v247_v21 = vpop.permute.xlu0 %246 }
 0x6d1   :  { %250 = vst.msk [vmem:[#allocation4 + $0x10] sm:$0xff] %vm34_vm0, %v247_v21  ;;  %755 = vmatmul.msk.f32.vlgmr.msra.gmra.mxu3 %vm34_vm0, %v247_v21 }
 0x754   :  { %v272_v23 = vpop.f32.mrf.mxu3 }
 0x755   :  { %v275_v24 = vadd.f32 %v754_v22, %v272_v23 }
 0x757   :  { %808 = vtanh.f32 %v275_v24  ;;  %v756_v26 = vmul.f32 -1.442695, %v275_v24 }
 0x759   :  { %810 = vpow2.f32 %v756_v26 }
 0x75d   :  { %v809_v25 = vpop.eup %808 }
 0x75e   :  { %298 = vrot.lane.b32.xlu1 %v809_v25, %s1003_s22 }
 0x75f   :  { %v811_v27 = vpop.eup %810 }
 0x760   :  { %v279_v28 = vadd.f32 1.0, %v811_v27 }
 0x762   :  { %812 = vrcp.f32 %v279_v28  ;;  %v291_v34 = vand.u32 2147483648, %v279_v28  ;;  %vm285_vm14 = vweird.f32 %v279_v28  ;;  %v289_v35 = vand.u32 2147483647, %v279_v28 }
 0x764   :  { %v292_v37 = vor.u32 1.1754944e-38, %v291_v34  ;;  %vm290_vm1 = vcmp.eq.f32.partialorder %v289_v35, 8.507059e+37 }
 0x768   :  { %v813_v29 = vpop.eup %812 }
 0x769   :  { %v281_v30 = vmul.f32 %v813_v29, %v279_v28  ;;  %vm286_vm13 = vweird.f32 %v813_v29 }
 0x76a   :  { %vm287_vm15 = vmor %vm285_vm14, %vm286_vm13 }
 0x76b   :  { %v282_v31 = vsub.f32 1.0, %v281_v30 }
 0x76d   :  { %v283_v32 = vmul.f32 %v813_v29, %v282_v31 }
 0x76f   :  { %v284_v33 = vadd.f32 %v813_v29, %v283_v32 }
 0x771   :  { %v288_v36 = vsel %vm287_vm15, %v813_v29, %v284_v33 }
 0x772   :  { %v293_v39 = vsel %vm290_vm1, %v292_v37, %v288_v36  ;;  %v763_v36 = vld [vmem:[%s1201_s0 + $0x30] sm:$0xff] }
 0x773   :  { %v296_v41 = vmul.f32 %v293_v39, %v238_v17 }
 0x7d0   :  { %v299_v38 = vpop.permute.xlu1 %298 }
 0x7d1   :  { %v301_v40 = vmul.f32 %v299_v38, %v293_v39 }
 0x7d3   :  { %303 = vrot.lane.b32.xlu2 %v301_v40, %s1003_s22 }
 0x82d   :  { %v304_v42 = vpop.permute.xlu2 %303 }
 0x82e   :  { %v306_v43 = vadd.f32 %v304_v42, %v296_v41 }
 0x830   :  { %814 = vtanh.f32 %v306_v43 }
 0x836   :  { %v815_v44 = vpop.eup %814 }
 0x837   :  { %309 = vrot.lane.b32.xlu0 %v815_v44, %s1003_s22 }
 0x8a9   :  { %v310_v45 = vpop.permute.xlu0 %309 }
 0x8aa   :  { %v312_v46 = vmul.f32 %v310_v45, %v293_v39 }
 0x8ac   :  { %314 = vrot.lane.b32.xlu1 %v312_v46, %s1004_s23 }
 0x91e   :  { %v315_v47 = vpop.permute.xlu1 %314 }
 0x91f   :  { %318 = vst.msk [vmem:[#allocation4 + $0x18] sm:$0xff] %vm34_vm0, %v315_v47  ;;  %758 = vmatmul.msk.f32.vlgmr.msrb.gmra.mxu0 %vm34_vm0, %v315_v47 }
 0x99c   :  { %v340_v49 = vpop.f32.mrf.mxu0 }
 0x99d   :  { %v343_v50 = vadd.f32 %v757_v48, %v340_v49 }
 0x99f   :  { %816 = vtanh.f32 %v343_v50  ;;  %v759_v52 = vmul.f32 -1.442695, %v343_v50 }
 0x9a1   :  { %818 = vpow2.f32 %v759_v52 }
 0x9a5   :  { %v817_v51 = vpop.eup %816 }
 0x9a6   :  { %366 = vrot.lane.b32.xlu2 %v817_v51, %s1003_s22 }
 0x9a7   :  { %v819_v53 = vpop.eup %818 }
 0x9a8   :  { %v347_v54 = vadd.f32 1.0, %v819_v53 }
 0x9aa   :  { %820 = vrcp.f32 %v347_v54  ;;  %v359_v60 = vand.u32 2147483648, %v347_v54  ;;  %vm353_vm3 = vweird.f32 %v347_v54  ;;  %v357_v61 = vand.u32 2147483647, %v347_v54 }
 0x9ac   :  { %v360_v63 = vor.u32 1.1754944e-38, %v359_v60  ;;  %vm358_vm5 = vcmp.eq.f32.partialorder %v357_v61, 8.507059e+37 }
 0x9b0   :  { %v821_v55 = vpop.eup %820 }
 0x9b1   :  { %v349_v56 = vmul.f32 %v821_v55, %v347_v54  ;;  %vm354_vm2 = vweird.f32 %v821_v55 }
 0x9b2   :  { %vm355_vm4 = vmor %vm353_vm3, %vm354_vm2  ;;  %vm632_vm3 = vcmask 130048  }
 0x9b3   :  { %v350_v57 = vsub.f32 1.0, %v349_v56 }
 0x9b5   :  { %v351_v58 = vmul.f32 %v821_v55, %v350_v57 }
 0x9b7   :  { %v352_v59 = vadd.f32 %v821_v55, %v351_v58 }
 0x9b9   :  { %v356_v62 = vsel %vm355_vm4, %v821_v55, %v352_v59 }
 0x9ba   :  { %v361_v1 = vsel %vm358_vm5, %v360_v63, %v356_v62  ;;  %v766_v62 = vld [vmem:[%s1201_s0 + $0x38] sm:$0xff]  ;;  %s1005_s0 = smov 96  }
 0x9bb   :  { %v364_v3 = vmul.f32 %v361_v1, %v306_v43 }
 0xa00   :  { %v367_v0 = vpop.permute.xlu2 %366 }
 0xa01   :  { %v369_v2 = vmul.f32 %v367_v0, %v361_v1 }
 0xa03   :  { %371 = vrot.lane.b32.xlu0 %v369_v2, %s1003_s22 }
 0xa75   :  { %v372_v4 = vpop.permute.xlu0 %371 }
 0xa76   :  { %v374_v5 = vadd.f32 %v372_v4, %v364_v3 }
 0xa78   :  { %822 = vtanh.f32 %v374_v5 }
 0xa7e   :  { %v823_v6 = vpop.eup %822 }
 0xa7f   :  { %377 = vrot.lane.b32.xlu1 %v823_v6, %s1003_s22 }
 0xaf1   :  { %v378_v7 = vpop.permute.xlu1 %377 }
 0xaf2   :  { %v380_v8 = vmul.f32 %v378_v7, %v361_v1 }
 0xaf4   :  { %382 = vrot.lane.b32.xlu2 %v380_v8, %s1004_s23 }
 0xb4e   :  { %v383_v9 = vpop.permute.xlu2 %382 }
 0xb4f   :  { %386 = vst.msk [vmem:[#allocation4 + $0x20] sm:$0xff] %vm34_vm0, %v383_v9  ;;  %761 = vmatmul.msk.f32.vlgmr.msrb.gmra.mxu1 %vm34_vm0, %v383_v9 }
 0xbcc   :  { %v408_v11 = vpop.f32.mrf.mxu1 }
 0xbcd   :  { %v411_v12 = vadd.f32 %v760_v10, %v408_v11 }
 0xbcf   :  { %824 = vtanh.f32 %v411_v12  ;;  %v762_v14 = vmul.f32 -1.442695, %v411_v12 }
 0xbd1   :  { %826 = vpow2.f32 %v762_v14 }
 0xbd5   :  { %v825_v13 = vpop.eup %824 }
 0xbd6   :  { %434 = vrot.lane.b32.xlu0 %v825_v13, %s1003_s22 }
 0xbd7   :  { %v827_v15 = vpop.eup %826 }
 0xbd8   :  { %v415_v16 = vadd.f32 1.0, %v827_v15 }
 0xbda   :  { %828 = vrcp.f32 %v415_v16  ;;  %v427_v22 = vand.u32 2147483648, %v415_v16  ;;  %vm421_vm7 = vweird.f32 %v415_v16  ;;  %v425_v23 = vand.u32 2147483647, %v415_v16 }
 0xbdc   :  { %v428_v25 = vor.u32 1.1754944e-38, %v427_v22  ;;  %vm426_vm9 = vcmp.eq.f32.partialorder %v425_v23, 8.507059e+37  ;;  %v604_v22 = vld [vmem:[%s1203_s2 + $0x10] sm:$0xff]  ;;  %v603_v23 = vld [vmem:[%s1203_s2 + $0x8] sm:$0xff] }
 0xbe0   :  { %v829_v17 = vpop.eup %828 }
 0xbe1   :  { %v417_v18 = vmul.f32 %v829_v17, %v415_v16  ;;  %vm422_vm6 = vweird.f32 %v829_v17 }
 0xbe2   :  { %vm423_vm8 = vmor %vm421_vm7, %vm422_vm6 }
 0xbe3   :  { %v418_v19 = vsub.f32 1.0, %v417_v18 }
 0xbe5   :  { %v419_v20 = vmul.f32 %v829_v17, %v418_v19 }
 0xbe7   :  { %v420_v21 = vadd.f32 %v829_v17, %v419_v20 }
 0xbe9   :  { %v424_v24 = vsel %vm423_vm8, %v829_v17, %v420_v21  ;;  %v605_v21 = vld [vmem:[%s1203_s2 + $0x18] sm:$0xff] }
 0xbea   :  { %v429_v27 = vsel %vm426_vm9, %v428_v25, %v424_v24  ;;  %624 = vmatpush.msra.mxu0 %v605_v21  ;;  %v602_v24 = vld [vmem:[%s1203_s2] sm:$0xff] }
 0xbeb   :  { %v432_v29 = vmul.f32 %v429_v27, %v374_v5 }
 0xbec   :  { %625 = vmatpush.msra.mxu0 %v604_v22 }
 0xbee   :  { %626 = vmatpush.msra.mxu0 %v603_v23 }
 0xbf0   :  { %627 = vmatpush.msra.mxu0 %v602_v24 }
 0xc48   :  { %v435_v26 = vpop.permute.xlu0 %434 }
 0xc49   :  { %v437_v28 = vmul.f32 %v435_v26, %v429_v27 }
 0xc4b   :  { %439 = vrot.lane.b32.xlu1 %v437_v28, %s1003_s22 }
 0xcbd   :  { %v440_v30 = vpop.permute.xlu1 %439 }
 0xcbe   :  { %v442_v31 = vadd.f32 %v440_v30, %v432_v29  ;;  %v783_v29 = vld [vmem:[%s1204_s3] ss:$0 sm:$0xff]  ;;  %s1008_s3 = smov [#allocation9]  }
 0xcbf   :  { %s690_s12 = sshll.u32 %s1008_s3, 4  ;;  %s714_s3 = sshll.u32 %s1211_s10, 4  ;;  %s691_s12 = int_to_ptr.vmem [resolvable:$true] %s690_s12  ;;  %s715_s3 = int_to_ptr.hbm [resolvable:$true] %s714_s3 }
 0xcc0   :  { %830 = vtanh.f32 %v442_v31 }
 0xcc6   :  { %v831_v32 = vpop.eup %830 }
 0xcc7   :  { %445 = vrot.lane.b32.xlu2 %v831_v32, %s1003_s22 }
 0xd21   :  { %v446_v33 = vpop.permute.xlu2 %445 }
 0xd22   :  { %v448_v34 = vmul.f32 %v446_v33, %v429_v27 }
 0xd24   :  { %450 = vrot.lane.b32.xlu0 %v448_v34, %s1004_s23 }
 0xd96   :  { %v451_v35 = vpop.permute.xlu0 %450 }
 0xd97   :  { %454 = vst.msk [vmem:[#allocation4 + $0x28] sm:$0xff] %vm34_vm0, %v451_v35  ;;  %764 = vmatmul.msk.f32.vlgmr.msrb.gmra.mxu2 %vm34_vm0, %v451_v35 }
 0xe1a   :  { %v476_v37 = vpop.f32.mrf.mxu2 }
 0xe1b   :  { %v479_v38 = vadd.f32 %v763_v36, %v476_v37  ;;  %v639_v36 = vld [vmem:[%s1205_s4] sm:$0xff] }
 0xe1d   :  { %832 = vtanh.f32 %v479_v38  ;;  %v765_v40 = vmul.f32 -1.442695, %v479_v38 }
 0xe1f   :  { %834 = vpow2.f32 %v765_v40 }
 0xe23   :  { %v833_v39 = vpop.eup %832 }
 0xe24   :  { %502 = vrot.lane.b32.xlu1 %v833_v39, %s1003_s22 }
 0xe25   :  { %v835_v41 = vpop.eup %834 }
 0xe26   :  { %v483_v42 = vadd.f32 1.0, %v835_v41 }
 0xe28   :  { %836 = vrcp.f32 %v483_v42  ;;  %v495_v48 = vand.u32 2147483648, %v483_v42  ;;  %vm489_vm11 = vweird.f32 %v483_v42  ;;  %v493_v49 = vand.u32 2147483647, %v483_v42 }
 0xe2a   :  { %v496_v51 = vor.u32 1.1754944e-38, %v495_v48  ;;  %vm494_vm13 = vcmp.eq.f32.partialorder %v493_v49, 8.507059e+37 }
 0xe2e   :  { %v837_v43 = vpop.eup %836 }
 0xe2f   :  { %v485_v44 = vmul.f32 %v837_v43, %v483_v42  ;;  %vm490_vm10 = vweird.f32 %v837_v43 }
 0xe30   :  { %vm491_vm12 = vmor %vm489_vm11, %vm490_vm10 }
 0xe31   :  { %v486_v45 = vsub.f32 1.0, %v485_v44 }
 0xe33   :  { %v487_v46 = vmul.f32 %v837_v43, %v486_v45 }
 0xe35   :  { %v488_v47 = vadd.f32 %v837_v43, %v487_v46 }
 0xe37   :  { %v492_v50 = vsel %vm491_vm12, %v837_v43, %v488_v47 }
 0xe38   :  { %v497_v53 = vsel %vm494_vm13, %v496_v51, %v492_v50 }
 0xe39   :  { %v500_v55 = vmul.f32 %v497_v53, %v442_v31 }
 0xe96   :  { %v503_v52 = vpop.permute.xlu1 %502 }
 0xe97   :  { %v505_v54 = vmul.f32 %v503_v52, %v497_v53 }
 0xe99   :  { %507 = vrot.lane.b32.xlu2 %v505_v54, %s1003_s22 }
 0xef3   :  { %v508_v56 = vpop.permute.xlu2 %507 }
 0xef4   :  { %v510_v57 = vadd.f32 %v508_v56, %v500_v55 }
 0xef6   :  { %838 = vtanh.f32 %v510_v57 }
 0xefc   :  { %v839_v58 = vpop.eup %838 }
 0xefd   :  { %513 = vrot.lane.b32.xlu0 %v839_v58, %s1003_s22 }
 0xf6f   :  { %v514_v59 = vpop.permute.xlu0 %513 }
 0xf70   :  { %v516_v60 = vmul.f32 %v514_v59, %v497_v53 }
 0xf72   :  { %518 = vrot.lane.b32.xlu1 %v516_v60, %s1004_s23 }
 0xfe4   :  { %v519_v61 = vpop.permute.xlu1 %518 }
 0xfe5   :  { %522 = vst.msk [vmem:[#allocation4 + $0x30] sm:$0xff] %vm34_vm0, %v519_v61  ;;  %767 = vmatmul.msk.f32.vlgmr.msrb.gmra.mxu3 %vm34_vm0, %v519_v61 }
0x1068   :  { %v544_v63 = vpop.f32.mrf.mxu3 }
0x1069   :  { %v547_v0 = vadd.f32 %v766_v62, %v544_v63 }
0x106b   :  { %840 = vtanh.f32 %v547_v0  ;;  %v768_v2 = vmul.f32 -1.442695, %v547_v0 }
0x106d   :  { %842 = vpow2.f32 %v768_v2 }
0x1071   :  { %v841_v1 = vpop.eup %840 }
0x1072   :  { %570 = vrot.lane.b32.xlu2 %v841_v1, %s1003_s22 }
0x1073   :  { %v843_v3 = vpop.eup %842 }
0x1074   :  { %v551_v4 = vadd.f32 1.0, %v843_v3 }
0x1076   :  { %844 = vrcp.f32 %v551_v4  ;;  %v563_v10 = vand.u32 2147483648, %v551_v4  ;;  %vm557_vm15 = vweird.f32 %v551_v4  ;;  %v561_v11 = vand.u32 2147483647, %v551_v4 }
0x1078   :  { %v564_v13 = vor.u32 1.1754944e-38, %v563_v10  ;;  %vm562_vm2 = vcmp.eq.f32.partialorder %v561_v11, 8.507059e+37 }
0x107c   :  { %v845_v5 = vpop.eup %844 }
0x107d   :  { %v553_v6 = vmul.f32 %v845_v5, %v551_v4  ;;  %vm558_vm14 = vweird.f32 %v845_v5 }
0x107e   :  { %vm559_vm1 = vmor %vm557_vm15, %vm558_vm14 }
0x107f   :  { %v554_v7 = vsub.f32 1.0, %v553_v6 }
0x1081   :  { %v555_v8 = vmul.f32 %v845_v5, %v554_v7 }
0x1083   :  { %v556_v9 = vadd.f32 %v845_v5, %v555_v8 }
0x1085   :  { %v560_v12 = vsel %vm559_vm1, %v845_v5, %v556_v9 }
0x1086   :  { %v565_v15 = vsel %vm562_vm2, %v564_v13, %v560_v12 }
0x1087   :  { %v568_v17 = vmul.f32 %v565_v15, %v510_v57 }
0x10cc   :  { %v571_v14 = vpop.permute.xlu2 %570 }
0x10cd   :  { %v573_v16 = vmul.f32 %v571_v14, %v565_v15 }
0x10cf   :  { %575 = vrot.lane.b32.xlu0 %v573_v16, %s1003_s22 }
0x1141   :  { %v576_v18 = vpop.permute.xlu0 %575 }
0x1142   :  { %v578_v19 = vadd.f32 %v576_v18, %v568_v17 }
0x1144   :  { %846 = vtanh.f32 %v578_v19 }
0x114a   :  { %v847_v20 = vpop.eup %846 }
0x114b   :  { %581 = vrot.lane.b32.xlu1 %v847_v20, %s1003_s22 }
0x1153   :  { %593 = vrot.lane.b32.xlu1 %v578_v19, %s1005_s0  ;;  %s656_s0 = sshll.u32 %s1206_s5, 4  ;;  %s701_s5 = sshll.u32 %s1013_s26, 4  ;;  %s657_s0 = int_to_ptr.hbm [resolvable:$true] %s656_s0  ;;  %s702_s5 = int_to_ptr.vmem [resolvable:$true] %s701_s5 }
0x11bd   :  { %v582_v25 = vpop.permute.xlu1 %581 }
0x11be   :  { %v584_v26 = vmul.f32 %v582_v25, %v565_v15 }
0x11c0   :  { %586 = vrot.lane.b32.xlu2 %v584_v26, %s1004_s23  ;;  %s1006_s23 = smov 112  }
0x11c5   :  { %v594_v27 = vpop.permute.xlu1 %593 }
0x11c6   :  { %596 = vst.msk [vmem:[#allocation3] sm:$0xff] %vm34_vm0, %v594_v27 }
0x11c7   :  { %601 = vst.msk [vmem:[#allocation8] sm:$0xff] %vm34_vm0, %v594_v27 }
0x121a   :  { %v587_v28 = vpop.permute.xlu2 %586 }
0x121b   :  { %590 = vst.msk [vmem:[#allocation4 + $0x38] sm:$0xff] %vm34_vm0, %v587_v28  ;;  %769 = vmatmul.msk.f32.vlgmr.msra.gmra.mxu0 %vm34_vm0, %v587_v28 }
0x121c   :  { %591 = vst.msk [vmem:[#allocation2] sm:$0xff] %vm34_vm0, %v587_v28  ;;  %662 = dma.vmem_to_hbm [thread:$0]  %s655_s19, 1024, %s657_s0, [#allocation5], %s1010_s6, %s1010_s6, %s1011_s20  }
0x121d   :  { %600 = vst.msk [vmem:[#allocation6] sm:$0xff] %vm34_vm0, %v587_v28 }
0x121e   :  { %673 = dma.vmem_to_hbm [thread:$0]  %s669_s28, 128, %s671_s11, [#allocation7]  }
0x121f   :  { %684 = dma.vmem_to_hbm [thread:$0]  %s680_s21, 128, %s682_s25, [#allocation7]  }
0x1298   :  { %v629_v30 = vpop.f32.mrf.mxu0 }
0x1299   :  { %v630_v31 = vadd.f32 %v783_v29, %v629_v30 }
0x129b   :  { %v640_v32 = vmul.f32 0.5, %v630_v31  ;;  %635 = vrot.lane.b32.xlu2 %v630_v31, %s1006_s23  ;;  %633 = vst.msk [vmem:[#allocation9] sm:$0xff] %vm632_vm3, %v630_v31 }
0x129c   :  { %695 = dma.vmem_to_hbm [thread:$0]  %s691_s12, 128, %s693_s15, [#allocation10]  }
0x129d   :  { %v641_v33 = vmul.f32 1.442695, %v640_v32 }
0x129f   :  { %848 = vpow2.f32 %v641_v33 }
0x12a5   :  { %v849_v34 = vpop.eup %848 }
0x12a6   :  { %644 = vrot.lane.b32.xlu0 %v849_v34, %s1006_s23 }
0x12f5   :  { %v636_v35 = vpop.permute.xlu2 %635 }
0x12f6   :  { %638 = vst.msk [vmem:[#allocation11] sm:$0xff] %vm632_vm3, %v636_v35 }
0x12f7   :  { %706 = dma.vmem_to_hbm [thread:$0]  %s702_s5, 128, %s704_s27, [#allocation10]  }
0x1318   :  { %v645_v37 = vpop.permute.xlu0 %644 }
0x1319   :  { %v647_v38 = vmul.f32 %v645_v37, %v639_v36 }
0x131b   :  { %v648_v39 = vadd.f32 %v647_v38, %v630_v31 }
0x131d   :  { %649 = vst.msk [vmem:[#allocation12] sm:$0xff] %vm632_vm3, %v648_v39 }
0x131e   :  { %717 = dma.vmem_to_hbm [thread:$0]  %s713_s29, 128, %s715_s3, [#allocation13]  }
0x131f   :  { %994 = dma.done.wait [#allocation5], 1024  }
0x1320   :  { %995 = vsyncadd [#allocation5], 4294966272 }
0x1321   :  { %996 = dma.done.wait [#allocation7], 256  }
0x1322   :  { %997 = vsyncadd [#allocation7], 4294967040 }
0x1323   :  { %998 = dma.done.wait [#allocation10], 256  }
0x1324   :  { %999 = vsyncadd [#allocation10], 4294967040 }
0x1325   :  { %1000 = dma.done.wait [#allocation13], 128  }
0x1326   :  { %1001 = vsyncadd [#allocation13], 4294967168 }
0x1327   :  { %742 = vsyncpa [#allocation5], 1 }
0x1328   :  { %743 = vsyncpa [#allocation7], 1 }
0x1329   :  { %744 = vsyncpa [#allocation10], 1 }
0x132a   :  { %745 = vsyncpa [#allocation13], 1 }

</bundles_post_ra>
